<compile_context>
chip_gen: v7x
topology: tpu7x:2x2x1
jax: 0.10.0
libtpu: 0.0.40
codegen_flags: <defaults>
</compile_context>

<pallas_src>
import functools

import jax
import jax.numpy as jnp
from jax import lax
from jax.experimental import pallas as pl
from jax.experimental.pallas import tpu as pltpu

EPS = 1e-5
D_IN, D_H1, D_H2, D_OUT = 12, 128, 256, 784
DEFAULT_TILE = 1024                  # rows per batch tile; ~10 MiB VMEM in pass C,
                                     # safe on v5e/v6e (128 MiB) and v7x (64 MiB).
VMEM_LIMIT = 32 * 1024 * 1024        # conservative scoped-VMEM cap for all gens.


def _round_up(x, m):
    return (x + m - 1) // m * m


# ---------- pass A: fc1 (bias dropped: cancels in BN) -> sum / sumsq stats ----------
def _stats1_kernel(x_ref, w1_ref, s_ref, ss_ref):
    i = pl.program_id(0)
    z = jnp.dot(x_ref[...], w1_ref[...], preferred_element_type=jnp.float32)

    @pl.when(i == 0)
    def _():
        s_ref[...] = jnp.zeros_like(s_ref)
        ss_ref[...] = jnp.zeros_like(ss_ref)

    # zero-padded batch rows give z == 0 (no bias) -> contribute nothing.
    # NOTE: E[z^2]-E[z]^2 in f32 is fine at this tolerance (inputs ~N(0,1)).
    s_ref[...] += jnp.sum(z, axis=0, keepdims=True)
    ss_ref[...] += jnp.sum(z * z, axis=0, keepdims=True)


# ---------- pass B: recompute fc1, bn1(fold)+relu, fc2 -> sum / sumsq stats ----------
def _stats2_kernel(x_ref, w1_ref, sc1_ref, sh1_ref, w2_ref, s_ref, ss_ref,
                   *, tile_n, n_valid, need_mask):
    i = pl.program_id(0)
    z1 = jnp.dot(x_ref[...], w1_ref[...], preferred_element_type=jnp.float32)
    h1 = jnp.maximum(z1 * sc1_ref[...] + sh1_ref[...], 0.0)
    if need_mask:
        # padded rows would yield relu(shift) != 0; zero them so they add
        # nothing to the bn2 statistics.
        rows = i * tile_n + lax.broadcasted_iota(jnp.int32, h1.shape, 0)
        h1 = jnp.where(rows < n_valid, h1, 0.0)
    z2 = jnp.dot(h1.astype(jnp.bfloat16), w2_ref[...],
                 preferred_element_type=jnp.float32)

    @pl.when(i == 0)
    def _():
        s_ref[...] = jnp.zeros_like(s_ref)
        ss_ref[...] = jnp.zeros_like(ss_ref)

    s_ref[...] += jnp.sum(z2, axis=0, keepdims=True)
    ss_ref[...] += jnp.sum(z2 * z2, axis=0, keepdims=True)


# ---------- pass C: fc1 + bn1 + relu + fc2 + bn2 + relu + fc3 + sigmoid ----------
def _decode_kernel(x_ref, w1_ref, sc1_ref, sh1_ref, w2_ref, sc2_ref, sh2_ref,
                   w3_ref, b3_ref, o_ref):
    z1 = jnp.dot(x_ref[...], w1_ref[...], preferred_element_type=jnp.float32)
    h1 = jnp.maximum(z1 * sc1_ref[...] + sh1_ref[...], 0.0)
    z2 = jnp.dot(h1.astype(jnp.bfloat16), w2_ref[...],
                 preferred_element_type=jnp.float32)
    h2 = jnp.maximum(z2 * sc2_ref[...] + sh2_ref[...], 0.0)
    y = jnp.dot(h2.astype(jnp.bfloat16), w3_ref[...],
                preferred_element_type=jnp.float32) + b3_ref[...]
    # sigmoid(y) = 1 / (1 + exp(-y)); exp and approx-reciprocal both run on the
    # EUP slot, keeping the epilogue off the VALU critical path.
    o_ref[...] = pl.reciprocal(1.0 + jnp.exp(-y), approx=True).astype(o_ref.dtype)


def poinet_decoder(x, params, *, tile_n=DEFAULT_TILE):
    """Returns sigmoid output in bf16, shape (n, 784)."""
    n = x.shape[0]
    x = x.astype(jnp.float32)

    # batch tiling: multiple-of-16 tiles (bf16-friendly), zero-pad the batch
    tile_n = _round_up(min(tile_n, _round_up(n, 16)), 16)
    n_pad = _round_up(n, tile_n)
    if n_pad != n:
        x = jnp.pad(x, ((0, n_pad - n), (0, 0)))   # zero rows -> zero fc1 rows (no bias)
    n_tiles = n_pad // tile_n
    inv_n = jnp.float32(1.0 / n)

    # weight prep: bf16 operands for the MXU-heavy layers; fc1 (K=12) stays f32
    w1 = params["w1"].astype(jnp.float32)
    w2 = params["w2"].astype(jnp.bfloat16)
    w3 = params["w3"].astype(jnp.bfloat16)
    b3 = params["b3"].astype(jnp.float32)
    # NOTE: params["b1"] / params["b2"] are intentionally unused in the kernels
    # (a pre-BatchNorm bias is exactly cancelled by the mean subtraction).

    def row_spec(f):
        return pl.BlockSpec((tile_n, f), lambda i: (i, 0))

    def const_spec(shape):
        return pl.BlockSpec(shape, lambda i: (0, 0))

    acc_params = pltpu.CompilerParams(dimension_semantics=("arbitrary",),
                                      vmem_limit_bytes=VMEM_LIMIT)
    par_params = pltpu.CompilerParams(dimension_semantics=("parallel",),
                                      vmem_limit_bytes=VMEM_LIMIT)

    def bn_fold(s, ss, gamma, beta):
        # tiny (1, F) glue between pallas_calls: fold batch stats into scale/shift
        mu = s * inv_n
        var = jnp.maximum(ss * inv_n - mu * mu, 0.0)
        scale = gamma * lax.rsqrt(var + EPS)
        shift = beta - mu * scale
        return scale.astype(jnp.float32), shift.astype(jnp.float32)

    # ---- pass A: bn1 statistics ----
    s1, ss1 = pl.pallas_call(
        _stats1_kernel,
        grid=(n_tiles,),
        in_specs=[row_spec(D_IN), const_spec((D_IN, D_H1))],
        out_specs=(const_spec((1, D_H1)), const_spec((1, D_H1))),
        out_shape=(jax.ShapeDtypeStruct((1, D_H1), jnp.float32),
                   jax.ShapeDtypeStruct((1, D_H1), jnp.float32)),
        compiler_params=acc_params,
    )(x, w1)
    sc1, sh1 = bn_fold(s1, ss1, params["g1"], params["be1"])

    # ---- pass B: bn2 statistics (recomputes fc1, never materializes z1/z2) ----
    kB = functools.partial(_stats2_kernel,
                           tile_n=tile_n, n_valid=n, need_mask=(n_pad != n))
    s2, ss2 = pl.pallas_call(
        kB,
        grid=(n_tiles,),
        in_specs=[row_spec(D_IN), const_spec((D_IN, D_H1)),
                  const_spec((1, D_H1)), const_spec((1, D_H1)),
                  const_spec((D_H1, D_H2))],
        out_specs=(const_spec((1, D_H2)), const_spec((1, D_H2))),
        out_shape=(jax.ShapeDtypeStruct((1, D_H2), jnp.float32),
                   jax.ShapeDtypeStruct((1, D_H2), jnp.float32)),
        compiler_params=acc_params,
    )(x, w1, sc1, sh1, w2)
    sc2, sh2 = bn_fold(s2, ss2, params["g2"], params["be2"])

    # ---- pass C: fused forward, bf16 784-wide output (no column pad/slice) ----
    out = pl.pallas_call(
        _decode_kernel,
        grid=(n_tiles,),
        in_specs=[row_spec(D_IN), const_spec((D_IN, D_H1)),
                  const_spec((1, D_H1)), const_spec((1, D_H1)),
                  const_spec((D_H1, D_H2)),
                  const_spec((1, D_H2)), const_spec((1, D_H2)),
                  const_spec((D_H2, D_OUT)), const_spec((1, D_OUT))],
        out_specs=pl.BlockSpec((tile_n, D_OUT), lambda i: (i, 0)),
        out_shape=jax.ShapeDtypeStruct((n_pad, D_OUT), jnp.bfloat16),
        compiler_params=par_params,
    )(x, w1, sc1, sh1, w2, sc2, sh2, w3, b3)

    if n_pad != n:
        out = out[:n]          # only when the batch was padded; rows only
    return out


def init_params(key):
    """Deterministic init mirroring the PyTorch module (weights stored (in, out))."""
    def linear(key, fan_in, fan_out):
        kw, kb = jax.random.split(key)
        bound = 1.0 / jnp.sqrt(float(fan_in))
        w = jax.random.uniform(kw, (fan_in, fan_out), jnp.float32, -bound, bound)
        b = jax.random.uniform(kb, (1, fan_out), jnp.float32, -bound, bound)
        return w, b

    k1, k2, k3 = jax.random.split(key, 3)
    w1, b1 = linear(k1, D_IN, D_H1)
    w2, b2 = linear(k2, D_H1, D_H2)
    w3, b3 = linear(k3, D_H2, D_OUT)
    return dict(
        w1=w1, b1=b1, g1=jnp.ones((1, D_H1), jnp.float32), be1=jnp.zeros((1, D_H1), jnp.float32),
        w2=w2, b2=b2, g2=jnp.ones((1, D_H2), jnp.float32), be2=jnp.zeros((1, D_H2), jnp.float32),
        w3=w3, b3=b3,
    )


def reference(x, p):
    """Pure-JAX reference matching the PyTorch module (training-mode BN, f32)."""
    h = x @ p["w1"] + p["b1"]
    mu = h.mean(0, keepdims=True); var = ((h - mu) ** 2).mean(0, keepdims=True)
    h = jnp.maximum(p["g1"] * (h - mu) / jnp.sqrt(var + EPS) + p["be1"], 0.0)
    h = h @ p["w2"] + p["b2"]
    mu = h.mean(0, keepdims=True); var = ((h - mu) ** 2).mean(0, keepdims=True)
    h = jnp.maximum(p["g2"] * (h - mu) / jnp.sqrt(var + EPS) + p["be2"], 0.0)
    return jax.nn.sigmoid(h @ p["w3"] + p["b3"])


if __name__ == "__main__":
    key = jax.random.PRNGKey(0)
    kx1, kx2, kp = jax.random.split(key, 3)
    params = init_params(kp)

    fwd = jax.jit(poinet_decoder, static_argnames=("tile_n",))

    # case 1: small batch (padded to one 16-row tile, masking path exercised)
    x_small = jax.random.normal(kx1, (8, D_IN), jnp.float32)
    out_small = jax.block_until_ready(fwd(x_small, params))
    ref_small = reference(x_small, params)
    assert out_small.shape == (8, D_OUT)
    assert jnp.allclose(out_small.astype(jnp.float32), ref_small, atol=2e-2, rtol=2e-2)

    # case 2: multi-tile batch with padding/masking + cross-tile BN accumulators
    x_big = jax.random.normal(kx2, (300, D_IN), jnp.float32)
    out_big = jax.block_until_ready(fwd(x_big, params, tile_n=128))
    ref_big = reference(x_big, params)
    assert out_big.shape == (300, D_OUT)
    assert jnp.allclose(out_big.astype(jnp.float32), ref_big, atol=2e-2, rtol=2e-2)

    print("KERNEL_OK")
</pallas_src>

<mosaic_0001>
module attributes {stable_mosaic.version = 11 : i64} {
  func.func @_stats1_kernel(%arg0: i32, %arg1: memref<16x12xf32, #tpu.memory_space<vmem>>, %arg2: memref<12x128xf32, #tpu.memory_space<vmem>>, %arg3: memref<1x128xf32, #tpu.memory_space<vmem>>, %arg4: memref<1x128xf32, #tpu.memory_space<vmem>>) attributes {dimension_semantics = [#tpu.dimension_semantics<arbitrary>], iteration_bounds = array<i64: 1>, scalar_prefetch = 0 : i64, scratch_operands = 0 : i64, tpu.core_type = #tpu.core_type<tc>, window_params = [{transform_indices = @transform_0, window_bounds = array<i64: 16, 12>}, {pipeline_mode = #tpu.pipeline_mode<synchronous>, transform_indices = @transform_1, window_bounds = array<i64: 12, 128>}, {pipeline_mode = #tpu.pipeline_mode<synchronous>, transform_indices = @transform_2, window_bounds = array<i64: 1, 128>}, {pipeline_mode = #tpu.pipeline_mode<synchronous>, transform_indices = @transform_3, window_bounds = array<i64: 1, 128>}]} {
    %c0 = arith.constant 0 : index
    %c0_0 = arith.constant 0 : index
    %0 = vector.load %arg1[%c0, %c0_0] : memref<16x12xf32, #tpu.memory_space<vmem>>, vector<16x12xf32>
    %c0_1 = arith.constant 0 : index
    %c0_2 = arith.constant 0 : index
    %1 = vector.load %arg2[%c0_1, %c0_2] : memref<12x128xf32, #tpu.memory_space<vmem>>, vector<12x128xf32>
    %cst = arith.constant dense<0.000000e+00> : vector<16x128xf32>
    %2 = tpu.matmul %0, %1, %cst {dimension_numbers = #tpu.dot_dimension_numbers<[1], [0], [0], [1], [0, 0, 1, 1], [], []>} : vector<16x12xf32>, vector<12x128xf32>, vector<16x128xf32> -> vector<16x128xf32>
    %c0_i32 = arith.constant 0 : i32
    %3 = arith.cmpi eq, %arg0, %c0_i32 : i32
    %4 = arith.extui %3 : i1 to i32
    %c0_i32_3 = arith.constant 0 : i32
    %5 = arith.cmpi ne, %4, %c0_i32_3 : i32
    scf.if %5 {
      %cst_14 = arith.constant 0.000000e+00 : f32
      %17 = vector.broadcast %cst_14 : f32 to vector<1x128xf32>
      %c0_15 = arith.constant 0 : index
      %c0_16 = arith.constant 0 : index
      %18 = vector.load %arg3[%c0_15, %c0_16] : memref<1x128xf32, #tpu.memory_space<vmem>>, vector<1x128xf32>
      tpu.vector_store %arg3[%c0_15, %c0_16], %17 {strides = array<i32>} : memref<1x128xf32, #tpu.memory_space<vmem>>, vector<1x128xf32>,
      %cst_17 = arith.constant 0.000000e+00 : f32
      %19 = vector.broadcast %cst_17 : f32 to vector<1x128xf32>
      %c0_18 = arith.constant 0 : index
      %c0_19 = arith.constant 0 : index
      %20 = vector.load %arg4[%c0_18, %c0_19] : memref<1x128xf32, #tpu.memory_space<vmem>>, vector<1x128xf32>
      tpu.vector_store %arg4[%c0_18, %c0_19], %19 {strides = array<i32>} : memref<1x128xf32, #tpu.memory_space<vmem>>, vector<1x128xf32>,
    } else {
    }
    %c0_4 = arith.constant 0 : index
    %c0_5 = arith.constant 0 : index
    %6 = vector.load %arg3[%c0_4, %c0_5] : memref<1x128xf32, #tpu.memory_space<vmem>>, vector<1x128xf32>
    %cst_6 = arith.constant dense<0.000000e+00> : vector<128xf32>
    %7 = vector.multi_reduction <add>, %2, %cst_6 [0] : vector<16x128xf32> to vector<128xf32>
    %8 = vector.shape_cast %7 : vector<128xf32> to vector<1x128xf32>
    %9 = arith.addf %6, %8 : vector<1x128xf32>
    %c0_7 = arith.constant 0 : index
    %c0_8 = arith.constant 0 : index
    %10 = vector.load %arg3[%c0_7, %c0_8] : memref<1x128xf32, #tpu.memory_space<vmem>>, vector<1x128xf32>
    tpu.vector_store %arg3[%c0_7, %c0_8], %9 {strides = array<i32>} : memref<1x128xf32, #tpu.memory_space<vmem>>, vector<1x128xf32>,
    %c0_9 = arith.constant 0 : index
    %c0_10 = arith.constant 0 : index
    %11 = vector.load %arg4[%c0_9, %c0_10] : memref<1x128xf32, #tpu.memory_space<vmem>>, vector<1x128xf32>
    %12 = arith.mulf %2, %2 : vector<16x128xf32>
    %cst_11 = arith.constant dense<0.000000e+00> : vector<128xf32>
    %13 = vector.multi_reduction <add>, %12, %cst_11 [0] : vector<16x128xf32> to vector<128xf32>
    %14 = vector.shape_cast %13 : vector<128xf32> to vector<1x128xf32>
    %15 = arith.addf %11, %14 : vector<1x128xf32>
    %c0_12 = arith.constant 0 : index
    %c0_13 = arith.constant 0 : index
    %16 = vector.load %arg4[%c0_12, %c0_13] : memref<1x128xf32, #tpu.memory_space<vmem>>, vector<1x128xf32>
    tpu.vector_store %arg4[%c0_12, %c0_13], %15 {strides = array<i32>} : memref<1x128xf32, #tpu.memory_space<vmem>>, vector<1x128xf32>,
    return
  }
  func.func @transform_0(%arg0: i32) -> (i32, i32) {
    %c0_i32 = arith.constant 0 : i32
    %c0_i32_0 = arith.constant 0 : i32
    return %arg0, %c0_i32 : i32, i32
  }
  func.func @transform_1(%arg0: i32) -> (i32, i32) {
    %c0_i32 = arith.constant 0 : i32
    %c0_i32_0 = arith.constant 0 : i32
    %c0_i32_1 = arith.constant 0 : i32
    return %c0_i32, %c0_i32_0 : i32, i32
  }
  func.func @transform_2(%arg0: i32) -> (i32, i32) {
    %c0_i32 = arith.constant 0 : i32
    %c0_i32_0 = arith.constant 0 : i32
    %c0_i32_1 = arith.constant 0 : i32
    return %c0_i32, %c0_i32_0 : i32, i32
  }
  func.func @transform_3(%arg0: i32) -> (i32, i32) {
    %c0_i32 = arith.constant 0 : i32
    %c0_i32_0 = arith.constant 0 : i32
    %c0_i32_1 = arith.constant 0 : i32
    return %c0_i32, %c0_i32_0 : i32, i32
  }
}

module attributes {stable_mosaic.version = 11 : i64} {
  func.func @_stats2_kernel(%arg0: i32, %arg1: memref<16x12xf32, #tpu.memory_space<vmem>>, %arg2: memref<12x128xf32, #tpu.memory_space<vmem>>, %arg3: memref<1x128xf32, #tpu.memory_space<vmem>>, %arg4: memref<1x128xf32, #tpu.memory_space<vmem>>, %arg5: memref<128x256xbf16, #tpu.memory_space<vmem>>, %arg6: memref<1x256xf32, #tpu.memory_space<vmem>>, %arg7: memref<1x256xf32, #tpu.memory_space<vmem>>) attributes {dimension_semantics = [#tpu.dimension_semantics<arbitrary>], iteration_bounds = array<i64: 1>, scalar_prefetch = 0 : i64, scratch_operands = 0 : i64, tpu.core_type = #tpu.core_type<tc>, window_params = [{transform_indices = @transform_0, window_bounds = array<i64: 16, 12>}, {pipeline_mode = #tpu.pipeline_mode<synchronous>, transform_indices = @transform_1, window_bounds = array<i64: 12, 128>}, {pipeline_mode = #tpu.pipeline_mode<synchronous>, transform_indices = @transform_2, window_bounds = array<i64: 1, 128>}, {pipeline_mode = #tpu.pipeline_mode<synchronous>, transform_indices = @transform_3, window_bounds = array<i64: 1, 128>}, {pipeline_mode = #tpu.pipeline_mode<synchronous>, transform_indices = @transform_4, window_bounds = array<i64: 128, 256>}, {pipeline_mode = #tpu.pipeline_mode<synchronous>, transform_indices = @transform_5, window_bounds = array<i64: 1, 256>}, {pipeline_mode = #tpu.pipeline_mode<synchronous>, transform_indices = @transform_6, window_bounds = array<i64: 1, 256>}]} {
    %c0 = arith.constant 0 : index
    %c0_0 = arith.constant 0 : index
    %0 = vector.load %arg1[%c0, %c0_0] : memref<16x12xf32, #tpu.memory_space<vmem>>, vector<16x12xf32>
    %c0_1 = arith.constant 0 : index
    %c0_2 = arith.constant 0 : index
    %1 = vector.load %arg2[%c0_1, %c0_2] : memref<12x128xf32, #tpu.memory_space<vmem>>, vector<12x128xf32>
    %cst = arith.constant dense<0.000000e+00> : vector<16x128xf32>
    %2 = tpu.matmul %0, %1, %cst {dimension_numbers = #tpu.dot_dimension_numbers<[1], [0], [0], [1], [0, 0, 1, 1], [], []>} : vector<16x12xf32>, vector<12x128xf32>, vector<16x128xf32> -> vector<16x128xf32>
    %c0_3 = arith.constant 0 : index
    %c0_4 = arith.constant 0 : index
    %3 = vector.load %arg3[%c0_3, %c0_4] : memref<1x128xf32, #tpu.memory_space<vmem>>, vector<1x128xf32>
    %4 = vector.broadcast %3 : vector<1x128xf32> to vector<16x128xf32>
    %5 = arith.mulf %2, %4 : vector<16x128xf32>
    %c0_5 = arith.constant 0 : index
    %c0_6 = arith.constant 0 : index
    %6 = vector.load %arg4[%c0_5, %c0_6] : memref<1x128xf32, #tpu.memory_space<vmem>>, vector<1x128xf32>
    %7 = vector.broadcast %6 : vector<1x128xf32> to vector<16x128xf32>
    %8 = arith.addf %5, %7 : vector<16x128xf32>
    %cst_7 = arith.constant 0.000000e+00 : f32
    %9 = vector.broadcast %cst_7 : f32 to vector<16x128xf32>
    %10 = arith.maximumf %8, %9 : vector<16x128xf32>
    %c16_i32 = arith.constant 16 : i32
    %11 = arith.muli %arg0, %c16_i32 : i32
    %12 = tpu.iota {dimensions = array<i32: 0>} : vector<16x128xi32>
    %13 = vector.broadcast %11 : i32 to vector<16x128xi32>
    %14 = arith.addi %13, %12 : vector<16x128xi32>
    %c8_i32 = arith.constant 8 : i32
    %15 = vector.broadcast %c8_i32 : i32 to vector<16x128xi32>
    %16 = arith.cmpi slt, %14, %15 : vector<16x128xi32>
    %cst_8 = arith.constant 0.000000e+00 : f32
    %17 = vector.broadcast %cst_8 : f32 to vector<16x128xf32>
    %18 = arith.select %16, %10, %17 : vector<16x128xi1>, vector<16x128xf32>
    %19 = arith.truncf %18 : vector<16x128xf32> to vector<16x128xbf16>
    %c0_9 = arith.constant 0 : index
    %c0_10 = arith.constant 0 : index
    %20 = vector.load %arg5[%c0_9, %c0_10] : memref<128x256xbf16, #tpu.memory_space<vmem>>, vector<128x256xbf16>
    %cst_11 = arith.constant dense<0.000000e+00> : vector<16x256xf32>
    %21 = tpu.matmul %19, %20, %cst_11 {dimension_numbers = #tpu.dot_dimension_numbers<[1], [0], [0], [1], [0, 0, 1, 1], [], []>} : vector<16x128xbf16>, vector<128x256xbf16>, vector<16x256xf32> -> vector<16x256xf32>
    %c0_i32 = arith.constant 0 : i32
    %22 = arith.cmpi eq, %arg0, %c0_i32 : i32
    %23 = arith.extui %22 : i1 to i32
    %c0_i32_12 = arith.constant 0 : i32
    %24 = arith.cmpi ne, %23, %c0_i32_12 : i32
    scf.if %24 {
      %cst_23 = arith.constant 0.000000e+00 : f32
      %36 = vector.broadcast %cst_23 : f32 to vector<1x256xf32>
      %c0_24 = arith.constant 0 : index
      %c0_25 = arith.constant 0 : index
      %37 = vector.load %arg6[%c0_24, %c0_25] : memref<1x256xf32, #tpu.memory_space<vmem>>, vector<1x256xf32>
      tpu.vector_store %arg6[%c0_24, %c0_25], %36 {strides = array<i32>} : memref<1x256xf32, #tpu.memory_space<vmem>>, vector<1x256xf32>,
      %cst_26 = arith.constant 0.000000e+00 : f32
      %38 = vector.broadcast %cst_26 : f32 to vector<1x256xf32>
      %c0_27 = arith.constant 0 : index
      %c0_28 = arith.constant 0 : index
      %39 = vector.load %arg7[%c0_27, %c0_28] : memref<1x256xf32, #tpu.memory_space<vmem>>, vector<1x256xf32>
      tpu.vector_store %arg7[%c0_27, %c0_28], %38 {strides = array<i32>} : memref<1x256xf32, #tpu.memory_space<vmem>>, vector<1x256xf32>,
    } else {
    }
    %c0_13 = arith.constant 0 : index
    %c0_14 = arith.constant 0 : index
    %25 = vector.load %arg6[%c0_13, %c0_14] : memref<1x256xf32, #tpu.memory_space<vmem>>, vector<1x256xf32>
    %cst_15 = arith.constant dense<0.000000e+00> : vector<256xf32>
    %26 = vector.multi_reduction <add>, %21, %cst_15 [0] : vector<16x256xf32> to vector<256xf32>
    %27 = vector.shape_cast %26 : vector<256xf32> to vector<1x256xf32>
    %28 = arith.addf %25, %27 : vector<1x256xf32>
    %c0_16 = arith.constant 0 : index
    %c0_17 = arith.constant 0 : index
    %29 = vector.load %arg6[%c0_16, %c0_17] : memref<1x256xf32, #tpu.memory_space<vmem>>, vector<1x256xf32>
    tpu.vector_store %arg6[%c0_16, %c0_17], %28 {strides = array<i32>} : memref<1x256xf32, #tpu.memory_space<vmem>>, vector<1x256xf32>,
    %c0_18 = arith.constant 0 : index
    %c0_19 = arith.constant 0 : index
    %30 = vector.load %arg7[%c0_18, %c0_19] : memref<1x256xf32, #tpu.memory_space<vmem>>, vector<1x256xf32>
    %31 = arith.mulf %21, %21 : vector<16x256xf32>
    %cst_20 = arith.constant dense<0.000000e+00> : vector<256xf32>
    %32 = vector.multi_reduction <add>, %31, %cst_20 [0] : vector<16x256xf32> to vector<256xf32>
    %33 = vector.shape_cast %32 : vector<256xf32> to vector<1x256xf32>
    %34 = arith.addf %30, %33 : vector<1x256xf32>
    %c0_21 = arith.constant 0 : index
    %c0_22 = arith.constant 0 : index
    %35 = vector.load %arg7[%c0_21, %c0_22] : memref<1x256xf32, #tpu.memory_space<vmem>>, vector<1x256xf32>
    tpu.vector_store %arg7[%c0_21, %c0_22], %34 {strides = array<i32>} : memref<1x256xf32, #tpu.memory_space<vmem>>, vector<1x256xf32>,
    return
  }
  func.func @transform_0(%arg0: i32) -> (i32, i32) {
    %c0_i32 = arith.constant 0 : i32
    %c0_i32_0 = arith.constant 0 : i32
    return %arg0, %c0_i32 : i32, i32
  }
  func.func @transform_1(%arg0: i32) -> (i32, i32) {
    %c0_i32 = arith.constant 0 : i32
    %c0_i32_0 = arith.constant 0 : i32
    %c0_i32_1 = arith.constant 0 : i32
    return %c0_i32, %c0_i32_0 : i32, i32
  }
  func.func @transform_2(%arg0: i32) -> (i32, i32) {
    %c0_i32 = arith.constant 0 : i32
    %c0_i32_0 = arith.constant 0 : i32
    %c0_i32_1 = arith.constant 0 : i32
    return %c0_i32, %c0_i32_0 : i32, i32
  }
  func.func @transform_3(%arg0: i32) -> (i32, i32) {
    %c0_i32 = arith.constant 0 : i32
    %c0_i32_0 = arith.constant 0 : i32
    %c0_i32_1 = arith.constant 0 : i32
    return %c0_i32, %c0_i32_0 : i32, i32
  }
  func.func @transform_4(%arg0: i32) -> (i32, i32) {
    %c0_i32 = arith.constant 0 : i32
    %c0_i32_0 = arith.constant 0 : i32
    %c0_i32_1 = arith.constant 0 : i32
    return %c0_i32, %c0_i32_0 : i32, i32
  }
  func.func @transform_5(%arg0: i32) -> (i32, i32) {
    %c0_i32 = arith.constant 0 : i32
    %c0_i32_0 = arith.constant 0 : i32
    %c0_i32_1 = arith.constant 0 : i32
    return %c0_i32, %c0_i32_0 : i32, i32
  }
  func.func @transform_6(%arg0: i32) -> (i32, i32) {
    %c0_i32 = arith.constant 0 : i32
    %c0_i32_0 = arith.constant 0 : i32
    %c0_i32_1 = arith.constant 0 : i32
    return %c0_i32, %c0_i32_0 : i32, i32
  }
}

module attributes {stable_mosaic.version = 11 : i64} {
  func.func @_decode_kernel(%arg0: i32, %arg1: memref<16x12xf32, #tpu.memory_space<vmem>>, %arg2: memref<12x128xf32, #tpu.memory_space<vmem>>, %arg3: memref<1x128xf32, #tpu.memory_space<vmem>>, %arg4: memref<1x128xf32, #tpu.memory_space<vmem>>, %arg5: memref<128x256xbf16, #tpu.memory_space<vmem>>, %arg6: memref<1x256xf32, #tpu.memory_space<vmem>>, %arg7: memref<1x256xf32, #tpu.memory_space<vmem>>, %arg8: memref<256x784xbf16, #tpu.memory_space<vmem>>, %arg9: memref<1x784xf32, #tpu.memory_space<vmem>>, %arg10: memref<16x784xbf16, #tpu.memory_space<vmem>>) attributes {dimension_semantics = [#tpu.dimension_semantics<parallel>], iteration_bounds = array<i64: 1>, scalar_prefetch = 0 : i64, scratch_operands = 0 : i64, tpu.core_type = #tpu.core_type<tc>, window_params = [{transform_indices = @transform_0, window_bounds = array<i64: 16, 12>}, {pipeline_mode = #tpu.pipeline_mode<synchronous>, transform_indices = @transform_1, window_bounds = array<i64: 12, 128>}, {pipeline_mode = #tpu.pipeline_mode<synchronous>, transform_indices = @transform_2, window_bounds = array<i64: 1, 128>}, {pipeline_mode = #tpu.pipeline_mode<synchronous>, transform_indices = @transform_3, window_bounds = array<i64: 1, 128>}, {pipeline_mode = #tpu.pipeline_mode<synchronous>, transform_indices = @transform_4, window_bounds = array<i64: 128, 256>}, {pipeline_mode = #tpu.pipeline_mode<synchronous>, transform_indices = @transform_5, window_bounds = array<i64: 1, 256>}, {pipeline_mode = #tpu.pipeline_mode<synchronous>, transform_indices = @transform_6, window_bounds = array<i64: 1, 256>}, {pipeline_mode = #tpu.pipeline_mode<synchronous>, transform_indices = @transform_7, window_bounds = array<i64: 256, 784>}, {pipeline_mode = #tpu.pipeline_mode<synchronous>, transform_indices = @transform_8, window_bounds = array<i64: 1, 784>}, {transform_indices = @transform_9, window_bounds = array<i64: 16, 784>}]} {
    %c0 = arith.constant 0 : index
    %c0_0 = arith.constant 0 : index
    %0 = vector.load %arg1[%c0, %c0_0] : memref<16x12xf32, #tpu.memory_space<vmem>>, vector<16x12xf32>
    %c0_1 = arith.constant 0 : index
    %c0_2 = arith.constant 0 : index
    %1 = vector.load %arg2[%c0_1, %c0_2] : memref<12x128xf32, #tpu.memory_space<vmem>>, vector<12x128xf32>
    %cst = arith.constant dense<0.000000e+00> : vector<16x128xf32>
    %2 = tpu.matmul %0, %1, %cst {dimension_numbers = #tpu.dot_dimension_numbers<[1], [0], [0], [1], [0, 0, 1, 1], [], []>} : vector<16x12xf32>, vector<12x128xf32>, vector<16x128xf32> -> vector<16x128xf32>
    %c0_3 = arith.constant 0 : index
    %c0_4 = arith.constant 0 : index
    %3 = vector.load %arg3[%c0_3, %c0_4] : memref<1x128xf32, #tpu.memory_space<vmem>>, vector<1x128xf32>
    %4 = vector.broadcast %3 : vector<1x128xf32> to vector<16x128xf32>
    %5 = arith.mulf %2, %4 : vector<16x128xf32>
    %c0_5 = arith.constant 0 : index
    %c0_6 = arith.constant 0 : index
    %6 = vector.load %arg4[%c0_5, %c0_6] : memref<1x128xf32, #tpu.memory_space<vmem>>, vector<1x128xf32>
    %7 = vector.broadcast %6 : vector<1x128xf32> to vector<16x128xf32>
    %8 = arith.addf %5, %7 : vector<16x128xf32>
    %cst_7 = arith.constant 0.000000e+00 : f32
    %9 = vector.broadcast %cst_7 : f32 to vector<16x128xf32>
    %10 = arith.maximumf %8, %9 : vector<16x128xf32>
    %11 = arith.truncf %10 : vector<16x128xf32> to vector<16x128xbf16>
    %c0_8 = arith.constant 0 : index
    %c0_9 = arith.constant 0 : index
    %12 = vector.load %arg5[%c0_8, %c0_9] : memref<128x256xbf16, #tpu.memory_space<vmem>>, vector<128x256xbf16>
    %cst_10 = arith.constant dense<0.000000e+00> : vector<16x256xf32>
    %13 = tpu.matmul %11, %12, %cst_10 {dimension_numbers = #tpu.dot_dimension_numbers<[1], [0], [0], [1], [0, 0, 1, 1], [], []>} : vector<16x128xbf16>, vector<128x256xbf16>, vector<16x256xf32> -> vector<16x256xf32>
    %c0_11 = arith.constant 0 : index
    %c0_12 = arith.constant 0 : index
    %14 = vector.load %arg6[%c0_11, %c0_12] : memref<1x256xf32, #tpu.memory_space<vmem>>, vector<1x256xf32>
    %15 = vector.broadcast %14 : vector<1x256xf32> to vector<16x256xf32>
    %16 = arith.mulf %13, %15 : vector<16x256xf32>
    %c0_13 = arith.constant 0 : index
    %c0_14 = arith.constant 0 : index
    %17 = vector.load %arg7[%c0_13, %c0_14] : memref<1x256xf32, #tpu.memory_space<vmem>>, vector<1x256xf32>
    %18 = vector.broadcast %17 : vector<1x256xf32> to vector<16x256xf32>
    %19 = arith.addf %16, %18 : vector<16x256xf32>
    %cst_15 = arith.constant 0.000000e+00 : f32
    %20 = vector.broadcast %cst_15 : f32 to vector<16x256xf32>
    %21 = arith.maximumf %19, %20 : vector<16x256xf32>
    %22 = arith.truncf %21 : vector<16x256xf32> to vector<16x256xbf16>
    %c0_16 = arith.constant 0 : index
    %c0_17 = arith.constant 0 : index
    %23 = vector.load %arg8[%c0_16, %c0_17] : memref<256x784xbf16, #tpu.memory_space<vmem>>, vector<256x784xbf16>
    %cst_18 = arith.constant dense<0.000000e+00> : vector<16x784xf32>
    %24 = tpu.matmul %22, %23, %cst_18 {dimension_numbers = #tpu.dot_dimension_numbers<[1], [0], [0], [1], [0, 0, 1, 1], [], []>} : vector<16x256xbf16>, vector<256x784xbf16>, vector<16x784xf32> -> vector<16x784xf32>
    %c0_19 = arith.constant 0 : index
    %c0_20 = arith.constant 0 : index
    %25 = vector.load %arg9[%c0_19, %c0_20] : memref<1x784xf32, #tpu.memory_space<vmem>>, vector<1x784xf32>
    %26 = vector.broadcast %25 : vector<1x784xf32> to vector<16x784xf32>
    %27 = arith.addf %24, %26 : vector<16x784xf32>
    %cst_21 = arith.constant 0.000000e+00 : f32
    %28 = vector.broadcast %cst_21 : f32 to vector<16x784xf32>
    %29 = arith.subf %28, %27 : vector<16x784xf32>
    %30 = math.exp %29 : vector<16x784xf32>
    %cst_22 = arith.constant 1.000000e+00 : f32
    %31 = vector.broadcast %cst_22 : f32 to vector<16x784xf32>
    %32 = arith.addf %31, %30 : vector<16x784xf32>
    %33 = tpu.reciprocal %32 {approx = true} : vector<16x784xf32> -> vector<16x784xf32>
    %34 = arith.truncf %33 : vector<16x784xf32> to vector<16x784xbf16>
    %c0_23 = arith.constant 0 : index
    %c0_24 = arith.constant 0 : index
    %35 = vector.load %arg10[%c0_23, %c0_24] : memref<16x784xbf16, #tpu.memory_space<vmem>>, vector<16x784xbf16>
    tpu.vector_store %arg10[%c0_23, %c0_24], %34 {strides = array<i32>} : memref<16x784xbf16, #tpu.memory_space<vmem>>, vector<16x784xbf16>,
    return
  }
  func.func @transform_0(%arg0: i32) -> (i32, i32) {
    %c0_i32 = arith.constant 0 : i32
    %c0_i32_0 = arith.constant 0 : i32
    return %arg0, %c0_i32 : i32, i32
  }
  func.func @transform_1(%arg0: i32) -> (i32, i32) {
    %c0_i32 = arith.constant 0 : i32
    %c0_i32_0 = arith.constant 0 : i32
    %c0_i32_1 = arith.constant 0 : i32
    return %c0_i32, %c0_i32_0 : i32, i32
  }
  func.func @transform_2(%arg0: i32) -> (i32, i32) {
    %c0_i32 = arith.constant 0 : i32
    %c0_i32_0 = arith.constant 0 : i32
    %c0_i32_1 = arith.constant 0 : i32
    return %c0_i32, %c0_i32_0 : i32, i32
  }
  func.func @transform_3(%arg0: i32) -> (i32, i32) {
    %c0_i32 = arith.constant 0 : i32
    %c0_i32_0 = arith.constant 0 : i32
    %c0_i32_1 = arith.constant 0 : i32
    return %c0_i32, %c0_i32_0 : i32, i32
  }
  func.func @transform_4(%arg0: i32) -> (i32, i32) {
    %c0_i32 = arith.constant 0 : i32
    %c0_i32_0 = arith.constant 0 : i32
    %c0_i32_1 = arith.constant 0 : i32
    return %c0_i32, %c0_i32_0 : i32, i32
  }
  func.func @transform_5(%arg0: i32) -> (i32, i32) {
    %c0_i32 = arith.constant 0 : i32
    %c0_i32_0 = arith.constant 0 : i32
    %c0_i32_1 = arith.constant 0 : i32
    return %c0_i32, %c0_i32_0 : i32, i32
  }
  func.func @transform_6(%arg0: i32) -> (i32, i32) {
    %c0_i32 = arith.constant 0 : i32
    %c0_i32_0 = arith.constant 0 : i32
    %c0_i32_1 = arith.constant 0 : i32
    return %c0_i32, %c0_i32_0 : i32, i32
  }
  func.func @transform_7(%arg0: i32) -> (i32, i32) {
    %c0_i32 = arith.constant 0 : i32
    %c0_i32_0 = arith.constant 0 : i32
    %c0_i32_1 = arith.constant 0 : i32
    return %c0_i32, %c0_i32_0 : i32, i32
  }
  func.func @transform_8(%arg0: i32) -> (i32, i32) {
    %c0_i32 = arith.constant 0 : i32
    %c0_i32_0 = arith.constant 0 : i32
    %c0_i32_1 = arith.constant 0 : i32
    return %c0_i32, %c0_i32_0 : i32, i32
  }
  func.func @transform_9(%arg0: i32) -> (i32, i32) {
    %c0_i32 = arith.constant 0 : i32
    %c0_i32_0 = arith.constant 0 : i32
    return %arg0, %c0_i32 : i32, i32
  }
}

</mosaic_0001>

<bundles_post_ra>
// kernel: poinet_decoder.3
= control target key start
LH: loop header
LB: loop body
LE: loop exit
PB: predicated region body
PF: predicated region fallthrough
CT: control target
= control target key end

     0   :  { %vm24_vm0 = vcmask 1043456   ;;  %vm17_vm1 = vcmask 97280   ;;  %vm161_vm2 = vmmov 1   ;;  %v162_v5 = vmov 0.0   ;;  %s213_s1 = inlined_call_operand.vmem [shape: f32[12,128], index: 1, kind: input, shape index: {}]   ;;  %s214_s0 = inlined_call_operand.vmem [shape: f32[16,12], index: 0, kind: input, shape index: {}]   ;;  %s215_s2 = inlined_call_operand.vmem [shape: f32[1,128], index: 2, kind: output, shape index: {0}]   ;;  %s216_s3 = inlined_call_operand.vmem [shape: f32[1,128], index: 3, kind: output, shape index: {1}]  }
   0x1   :  { %v15_v0 = vld [vmem:[%s213_s1] sm:$0xff]  ;;  %v16_v1 = vld [vmem:[%s213_s1 + $0x8] sm:$0xf]  ;;  %vm154_vm3 = vmpackc.low %vm24_vm0, %vm161_vm2  ;;  %107 = vst [vmem:[%s215_s2] sm:$0x1] %v162_v5 }
   0x2   :  { %v153_v2 = vpack.c.bf16 %v16_v1, %v15_v0  ;;  %v13_v3 = vld [vmem:[%s214_s0] sm:$0xff]  ;;  %v14_v4 = vld [vmem:[%s214_s0 + $0x8] sm:$0xff]  ;;  %108 = vst [vmem:[%s216_s3] sm:$0x1] %v162_v5 }
   0x3   :  { %150 = vmatprep.mubr.msk.f32.mxu0 %vm17_vm1, %v13_v3 }
   0x4   :  { %155 = vmatprep.subr.msk.bf16.mxu0 %vm154_vm3, %v153_v2 }
   0x5   :  { %158 = vmatpush3.bf16.msk.msra.mxu0 %vm154_vm3, %v153_v2 }
   0x8   :  { %151 = vmatmul.mubr.msk.f32.vlgmr.msra.gmra.mrb[0].mxu0 %vm17_vm1, %v14_v4  ;;  %v109_v21 = vld [vmem:[%s215_s2] sm:$0x1] }
   0x9   :  { %v119_v24 = vld [vmem:[%s216_s3] sm:$0x1] }
  0xdb   :  { %v152_v6 = vpop.f32.mrb[0].mxu0 }
  0xdc   :  { %v121_v7 = vmul.f32 %v152_v6, %v152_v6  ;;  %v94_v8 = vpop.f32.mrb[1].mxu0 }
  0xdd   :  { %v110_v9 = vadd.f32 %v152_v6, %v94_v8  ;;  %v120_v10 = vmul.f32 %v94_v8, %v94_v8 }
  0xdf   :  { %v111_v11 = vrot.slane %v110_v9, 4  ;;  %v122_v12 = vadd.f32 %v121_v7, %v120_v10 }
  0xe1   :  { %v112_v13 = vadd.f32 %v111_v11, %v110_v9  ;;  %v123_v14 = vrot.slane %v122_v12, 4 }
  0xe3   :  { %v113_v15 = vrot.slane %v112_v13, 2  ;;  %v124_v16 = vadd.f32 %v123_v14, %v122_v12 }
  0xe5   :  { %v114_v17 = vadd.f32 %v113_v15, %v112_v13  ;;  %v125_v18 = vrot.slane %v124_v16, 2 }
  0xe7   :  { %v115_v19 = vrot.slane %v114_v17, 1  ;;  %v126_v20 = vadd.f32 %v125_v18, %v124_v16 }
  0xe9   :  { %v116_v22 = vadd.f32 %v115_v19, %v114_v17  ;;  %v127_v23 = vrot.slane %v126_v20, 1 }
  0xeb   :  { %v117_v25 = vadd.f32 %v116_v22, %v109_v21  ;;  %v128_v26 = vadd.f32 %v127_v23, %v126_v20 }
  0xed   :  { %118 = vst [vmem:[%s215_s2] sm:$0x1] %v117_v25  ;;  %v129_v27 = vadd.f32 %v128_v26, %v119_v24 }
  0xef   :  { %130 = vst [vmem:[%s216_s3] sm:$0x1] %v129_v27 }

// kernel: poinet_decoder.4
= control target key start
LH: loop header
LB: loop body
LE: loop exit
PB: predicated region body
PF: predicated region fallthrough
CT: control target
= control target key end

     0   :  { %vm34_vm0 = vcmask 1043456   ;;  %vm27_vm1 = vcmask 97280   ;;  %vm446_vm2 = vmmov 1   ;;  %v447_v21 = vmov 0   ;;  %s583_s1 = inlined_call_operand.vmem [shape: f32[12,128], index: 1, kind: input, shape index: {}]   ;;  %s584_s0 = inlined_call_operand.vmem [shape: f32[16,12], index: 0, kind: input, shape index: {}]   ;;  %s585_s4 = inlined_call_operand.vmem [shape: bf16[128,256], index: 4, kind: input, shape index: {}]   ;;  %s586_s5 = inlined_call_operand.vmem [shape: f32[1,256], index: 5, kind: output, shape index: {0}]   ;;  %s587_s6 = inlined_call_operand.vmem [shape: f32[1,256], index: 6, kind: output, shape index: {1}]   ;;  %s588_s2 = inlined_call_operand.vmem [shape: f32[1,128], index: 2, kind: input, shape index: {}]   ;;  %s589_s3 = inlined_call_operand.vmem [shape: f32[1,128], index: 3, kind: input, shape index: {}]  }
   0x1   :  { %v25_v0 = vld [vmem:[%s583_s1] sm:$0xff]  ;;  %v26_v1 = vld [vmem:[%s583_s1 + $0x8] sm:$0xf]  ;;  %vm413_vm3 = vmpackc.low %vm34_vm0, %vm446_vm2  ;;  %273 = vmatprep.mubr.bf16.mxu1 %v447_v21  ;;  %v288_v22 = vlaneseq  ;;  %v448_v24 = vmov 0.0   ;;  %v449_v50 = vmov 1966171168  }
   0x2   :  { %v412_v2 = vpack.c.bf16 %v26_v1, %v25_v0  ;;  %v23_v3 = vld [vmem:[%s584_s0] sm:$0xff]  ;;  %v425_v6 = vld [vmem:[%s585_s4 + $0x14] ss:$8 sps:$4 sm:$0xff]   ;;  %v24_v7 = vld [vmem:[%s584_s0 + $0x8] sm:$0xff]  ;;  %v313_v51 = vunpack.c.l.s4 %v449_v50 }
   0x3   :  { %409 = vmatprep.mubr.msk.f32.mxu0 %vm27_vm1, %v23_v3  ;;  %v422_v4 = vld [vmem:[%s585_s4 + $0x4] ss:$8 sps:$4 sm:$0xff]   ;;  %v424_v5 = vld [vmem:[%s585_s4] ss:$8 sps:$4 sm:$0xff]   ;;  %v427_v8 = vld [vmem:[%s585_s4 + $0x10] ss:$8 sps:$4 sm:$0xff]  }
   0x4   :  { %414 = vmatprep.subr.msk.bf16.mxu0 %vm413_vm3, %v412_v2  ;;  %241 = vmatprep.subr.bf16.mxu1 %v422_v4  ;;  %v428_v9 = vld [vmem:[%s585_s4 + $0x24] ss:$8 sps:$4 sm:$0xff]   ;;  %v430_v10 = vld [vmem:[%s585_s4 + $0x20] ss:$8 sps:$4 sm:$0xff]   ;;  %v431_v11 = vld [vmem:[%s585_s4 + $0x34] ss:$8 sps:$4 sm:$0xff]   ;;  %v314_v61 = vunpack.c.0.s8 %v313_v51 }
   0x5   :  { %417 = vmatpush3.bf16.msk.msra.mxu0 %vm413_vm3, %v412_v2  ;;  %242 = vmatpush1.bf16.msra.mxu1 %v424_v5  ;;  %v433_v12 = vld [vmem:[%s585_s4 + $0x30] ss:$8 sps:$4 sm:$0xff]   ;;  %v434_v13 = vld [vmem:[%s585_s4 + $0x44] ss:$8 sps:$4 sm:$0xff]   ;;  %v436_v14 = vld [vmem:[%s585_s4 + $0x40] ss:$8 sps:$4 sm:$0xff]  }
   0x6   :  { %243 = vmatprep.subr.bf16.mxu1 %v425_v6  ;;  %v437_v15 = vld [vmem:[%s585_s4 + $0x54] ss:$8 sps:$4 sm:$0xff]   ;;  %v439_v16 = vld [vmem:[%s585_s4 + $0x50] ss:$8 sps:$4 sm:$0xff]   ;;  %v440_v17 = vld [vmem:[%s585_s4 + $0x64] ss:$8 sps:$4 sm:$0xff]  }
   0x7   :  { %v442_v18 = vld [vmem:[%s585_s4 + $0x60] ss:$8 sps:$4 sm:$0xff]   ;;  %v443_v19 = vld [vmem:[%s585_s4 + $0x74] ss:$8 sps:$4 sm:$0xff]   ;;  %v445_v20 = vld [vmem:[%s585_s4 + $0x70] ss:$8 sps:$4 sm:$0xff]  }
   0x8   :  { %410 = vmatmul.mubr.msk.f32.vlgmr.msra.gmra.mrb[0].mxu0 %vm27_vm1, %v24_v7  ;;  %vm547_vm4 = vcmp.lt.s32.totalorder %v288_v22, 256  ;;  %v383_v25 = vld [vmem:[%s588_s2] ss:$0 sm:$0xff]  ;;  %v316_v59 = vshrl.u32 %v288_v22, 7 }
   0x9   :  { %244 = vmatpush1.bf16.msra.mxu1 %v427_v8  ;;  %292 = vst.msk [vmem:[%s586_s5] sm:$0x3] %vm547_vm4, %v448_v24  ;;  %293 = vst.msk [vmem:[%s587_s6] sm:$0x3] %vm547_vm4, %v448_v24  ;;  %v384_v28 = vld [vmem:[%s589_s3] ss:$0 sm:$0xff] }
   0xa   :  { %245 = vmatprep.subr.bf16.mxu1 %v428_v9  ;;  %v317_v6 = vsub.s32 %v314_v61, %v316_v59 }
   0xd   :  { %246 = vmatpush1.bf16.msra.mxu1 %v430_v10 }
   0xe   :  { %247 = vmatprep.subr.bf16.mxu1 %v431_v11 }
  0x11   :  { %248 = vmatpush1.bf16.msra.mxu1 %v433_v12 }
  0x12   :  { %249 = vmatprep.subr.bf16.mxu1 %v434_v13  ;;  %v294_v13 = vld [vmem:[%s586_s5] sm:$0x3] }
  0x15   :  { %250 = vmatpush1.bf16.msra.mxu1 %v436_v14 }
  0x16   :  { %251 = vmatprep.subr.bf16.mxu1 %v437_v15 }
  0x19   :  { %252 = vmatpush1.bf16.msra.mxu1 %v439_v16  ;;  %v333_v16 = vld [vmem:[%s587_s6] sm:$0x3] }
  0x1a   :  { %253 = vmatprep.subr.bf16.mxu1 %v440_v17 }
  0x1d   :  { %254 = vmatpush1.bf16.msra.mxu1 %v442_v18 }
  0x1e   :  { %255 = vmatprep.subr.bf16.mxu1 %v443_v19 }
  0x21   :  { %256 = vmatpush1.bf16.msra.mxu1 %v445_v20 }
  0xdb   :  { %v411_v26 = vpop.f32.mrb[0].mxu0 }
  0xdc   :  { %v104_v27 = vpop.f32.mrb[1].mxu0 }
  0xdd   :  { %v120_v29 = vmul.f32 %v383_v25, %v104_v27 }
  0xdf   :  { %v129_v30 = vadd.f32 %v384_v28, %v120_v29 }
  0xe1   :  { %v131_v31 = vmax.f32 %v129_v30, 0.0 }
  0xe3   :  { %v144_v32 = vpack.c.bf16 %v448_v24, %v131_v31 }
  0xe5   :  { %274 = vmatmul.mubr.bf16.vlgmr.msra.gmra.mrb[0].mxu1 %v144_v32 }
 0x1b8   :  { %v275_v33 = vpop.f32.mrb[0].mxu1 }
 0x1b9   :  { %v277_v34 = vpop.f32.mrb[1].mxu1  ;;  %v334_v36 = vmul.f32 %v275_v33, %v275_v33 }
 0x1ba   :  { %v279_v35 = vpop.f32.mrb[2].mxu1  ;;  %v335_v40 = vmul.f32 %v277_v34, %v277_v34 }
 0x1bb   :  { %v295_v37 = vadd.f32 %v279_v35, %v275_v33  ;;  %v336_v38 = vmul.f32 %v279_v35, %v279_v35  ;;  %v281_v39 = vpop.f32.mrb[3].mxu1 }
 0x1bc   :  { %v302_v41 = vadd.f32 %v281_v39, %v277_v34  ;;  %v337_v42 = vmul.f32 %v281_v39, %v281_v39 }
 0x1bd   :  { %v296_v43 = vrot.slane %v295_v37, 4  ;;  %v338_v44 = vadd.f32 %v336_v38, %v334_v36 }
 0x1be   :  { %v303_v45 = vrot.slane %v302_v41, 4  ;;  %v345_v46 = vadd.f32 %v337_v42, %v335_v40 }
 0x1bf   :  { %v297_v47 = vadd.f32 %v296_v43, %v295_v37  ;;  %v339_v48 = vrot.slane %v338_v44, 4 }
 0x1c0   :  { %v304_v49 = vadd.f32 %v303_v45, %v302_v41  ;;  %v346_v52 = vrot.slane %v345_v46, 4 }
 0x1c1   :  { %v298_v53 = vrot.slane %v297_v47, 2  ;;  %v340_v54 = vadd.f32 %v339_v48, %v338_v44 }
 0x1c2   :  { %v305_v55 = vrot.slane %v304_v49, 2  ;;  %v347_v56 = vadd.f32 %v346_v52, %v345_v46 }
 0x1c3   :  { %v299_v57 = vadd.f32 %v298_v53, %v297_v47  ;;  %v341_v58 = vrot.slane %v340_v54, 2 }
 0x1c4   :  { %v306_v60 = vadd.f32 %v305_v55, %v304_v49  ;;  %v348_v62 = vrot.slane %v347_v56, 2 }
 0x1c5   :  { %v300_v63 = vrot.slane %v299_v57, 1  ;;  %v342_v0 = vadd.f32 %v341_v58, %v340_v54 }
 0x1c6   :  { %v307_v1 = vrot.slane %v306_v60, 1  ;;  %v349_v2 = vadd.f32 %v348_v62, %v347_v56 }
 0x1c7   :  { %v301_v3 = vadd.f32 %v300_v63, %v299_v57  ;;  %v343_v4 = vrot.slane %v342_v0, 1 }
 0x1c8   :  { %v308_v5 = vadd.f32 %v307_v1, %v306_v60  ;;  %v350_v7 = vrot.slane %v349_v2, 1 }
 0x1c9   :  { %v344_v8 = vadd.f32 %v343_v4, %v342_v0 }
 0x1ca   :  { %v311_v9 = vcombine.low %v301_v3, %v308_v5  ;;  %v351_v10 = vadd.f32 %v350_v7, %v349_v2 }
 0x1cc   :  { %v318_v11 = vrot.slane %v311_v9, %v317_v6  ;;  %v354_v12 = vcombine.low %v344_v8, %v351_v10 }
 0x1ce   :  { %v325_v14 = vrot.slane %v318_v11, %v317_v6  ;;  %v361_v15 = vrot.slane %v354_v12, %v317_v6 }
 0x1d0   :  { %v327_v17 = vadd.f32 %v325_v14, %v294_v13  ;;  %v368_v18 = vrot.slane %v361_v15, %v317_v6 }
 0x1d2   :  { %332 = vst.msk [vmem:[%s586_s5] sm:$0x3] %vm547_vm4, %v327_v17  ;;  %v370_v19 = vadd.f32 %v368_v18, %v333_v16 }
 0x1d4   :  { %371 = vst.msk [vmem:[%s587_s6] sm:$0x3] %vm547_vm4, %v370_v19 }

// kernel: poinet_decoder.5
= control target key start
LH: loop header
LB: loop body
LE: loop exit
PB: predicated region body
PF: predicated region fallthrough
CT: control target
= control target key end

     0   :  { %vm44_vm0 = vcmask 1043456   ;;  %vm37_vm1 = vcmask 97280   ;;  %vm1789_vm2 = vmmov 1   ;;  %v1790_v21 = vmov 0   ;;  %s2314_s1 = inlined_call_operand.vmem [shape: f32[12,128], index: 1, kind: input, shape index: {}]   ;;  %s2315_s0 = inlined_call_operand.vmem [shape: f32[16,12], index: 0, kind: input, shape index: {}]   ;;  %s2316_s4 = inlined_call_operand.vmem [shape: bf16[128,256], index: 4, kind: input, shape index: {}]   ;;  %s2317_s7 = inlined_call_operand.vmem [shape: bf16[256,784], index: 7, kind: input, shape index: {}]   ;;  %s2318_s2 = inlined_call_operand.vmem [shape: f32[1,128], index: 2, kind: input, shape index: {}]   ;;  %s2319_s3 = inlined_call_operand.vmem [shape: f32[1,128], index: 3, kind: input, shape index: {}]   ;;  %s2320_s5 = inlined_call_operand.vmem [shape: f32[1,256], index: 5, kind: input, shape index: {}]   ;;  %s2321_s6 = inlined_call_operand.vmem [shape: f32[1,256], index: 6, kind: input, shape index: {}]   ;;  %s2322_s8 = inlined_call_operand.vmem [shape: f32[1,784], index: 8, kind: input, shape index: {}]   ;;  %s2323_s9 = inlined_call_operand.vmem [shape: bf16[16,784], index: 9, kind: output, shape index: {}]  }
   0x1   :  { %v35_v0 = vld [vmem:[%s2314_s1] sm:$0xff]  ;;  %v36_v1 = vld [vmem:[%s2314_s1 + $0x8] sm:$0xf]  ;;  %vm1542_vm3 = vmpackc.low %vm44_vm0, %vm1789_vm2  ;;  %272 = vmatprep.mubr.bf16.mxu1 %v1790_v21  ;;  %vm1349_vm4 = vcmask 125952  }
   0x2   :  { %v1541_v2 = vpack.c.bf16 %v36_v1, %v35_v0  ;;  %v33_v3 = vld [vmem:[%s2315_s0] sm:$0xff]  ;;  %v1552_v6 = vld [vmem:[%s2316_s4 + $0x14] ss:$8 sps:$4 sm:$0xff]   ;;  %v34_v7 = vld [vmem:[%s2315_s0 + $0x8] sm:$0xff] }
   0x3   :  { %1538 = vmatprep.mubr.msk.f32.mxu0 %vm37_vm1, %v33_v3  ;;  %v1549_v4 = vld [vmem:[%s2316_s4 + $0x4] ss:$8 sps:$4 sm:$0xff]   ;;  %v1551_v5 = vld [vmem:[%s2316_s4] ss:$8 sps:$4 sm:$0xff]   ;;  %v1554_v8 = vld [vmem:[%s2316_s4 + $0x10] ss:$8 sps:$4 sm:$0xff]  }
   0x4   :  { %1543 = vmatprep.subr.msk.bf16.mxu0 %vm1542_vm3, %v1541_v2  ;;  %240 = vmatprep.subr.bf16.mxu1 %v1549_v4  ;;  %v1555_v9 = vld [vmem:[%s2316_s4 + $0x24] ss:$8 sps:$4 sm:$0xff]   ;;  %v1557_v10 = vld [vmem:[%s2316_s4 + $0x20] ss:$8 sps:$4 sm:$0xff]   ;;  %v1558_v11 = vld [vmem:[%s2316_s4 + $0x34] ss:$8 sps:$4 sm:$0xff]  }
   0x5   :  { %1546 = vmatpush3.bf16.msk.msra.mxu0 %vm1542_vm3, %v1541_v2  ;;  %241 = vmatpush1.bf16.msra.mxu1 %v1551_v5  ;;  %v1560_v12 = vld [vmem:[%s2316_s4 + $0x30] ss:$8 sps:$4 sm:$0xff]   ;;  %v1561_v13 = vld [vmem:[%s2316_s4 + $0x44] ss:$8 sps:$4 sm:$0xff]   ;;  %v1563_v14 = vld [vmem:[%s2316_s4 + $0x40] ss:$8 sps:$4 sm:$0xff]  }
   0x6   :  { %242 = vmatprep.subr.bf16.mxu1 %v1552_v6  ;;  %v1564_v15 = vld [vmem:[%s2316_s4 + $0x54] ss:$8 sps:$4 sm:$0xff]   ;;  %v1566_v16 = vld [vmem:[%s2316_s4 + $0x50] ss:$8 sps:$4 sm:$0xff]   ;;  %v1567_v17 = vld [vmem:[%s2316_s4 + $0x64] ss:$8 sps:$4 sm:$0xff]  }
   0x7   :  { %v1569_v18 = vld [vmem:[%s2316_s4 + $0x60] ss:$8 sps:$4 sm:$0xff]   ;;  %v1570_v19 = vld [vmem:[%s2316_s4 + $0x74] ss:$8 sps:$4 sm:$0xff]   ;;  %v1572_v20 = vld [vmem:[%s2316_s4 + $0x70] ss:$8 sps:$4 sm:$0xff]  }
   0x8   :  { %1539 = vmatmul.mubr.msk.f32.vlgmr.msra.gmra.mrb[0].mxu0 %vm37_vm1, %v34_v7  ;;  %v1573_v22 = vld [vmem:[%s2317_s7] ss:$28 sps:$4 sm:$0xff]   ;;  %v1578_v24 = vld [vmem:[%s2317_s7 + $0xc] ss:$28 sps:$4 sm:$0xff]   ;;  %v1579_v26 = vld [vmem:[%s2317_s7 + $0x38] ss:$28 sps:$4 sm:$0xff]  }
   0x9   :  { %243 = vmatpush1.bf16.msra.mxu1 %v1554_v8  ;;  %v1575_v23 = vld [vmem:[%s2317_s7 + $0x4] ss:$28 sps:$4 sm:$0xff]   ;;  %v1581_v25 = vld [vmem:[%s2317_s7 + $0x3c] ss:$28 sps:$4 sm:$0xff]   ;;  %v1587_v27 = vld [vmem:[%s2317_s7 + $0x74] ss:$28 sps:$4 sm:$0xff]  }
   0xa   :  { %244 = vmatprep.subr.bf16.mxu1 %v1555_v9  ;;  %1062 = vmatprep.subr.bf16.mxu0 %v1575_v23  ;;  %v1585_v28 = vld [vmem:[%s2317_s7 + $0x70] ss:$28 sps:$4 sm:$0xff]   ;;  %v1591_v30 = vld [vmem:[%s2317_s7 + $0xa8] ss:$28 sps:$4 sm:$0xff]   ;;  %v1597_v32 = vld [vmem:[%s2317_s7 + $0xe0] ss:$28 sps:$4 sm:$0xff]  }
   0xb   :  { %1063 = vmatpush1.bf16.msra.mxu0 %v1573_v22  ;;  %v1593_v29 = vld [vmem:[%s2317_s7 + $0xac] ss:$28 sps:$4 sm:$0xff]   ;;  %v1599_v31 = vld [vmem:[%s2317_s7 + $0xe4] ss:$28 sps:$4 sm:$0xff]   ;;  %v1605_v33 = vld [vmem:[%s2317_s7 + $0x11c] ss:$28 sps:$4 sm:$0xff]  }
   0xc   :  { %1064 = vmatprep.subr.bf16.mxu0 %v1581_v25  ;;  %v1603_v34 = vld [vmem:[%s2317_s7 + $0x118] ss:$28 sps:$4 sm:$0xff]   ;;  %v1609_v36 = vld [vmem:[%s2317_s7 + $0x150] ss:$28 sps:$4 sm:$0xff]   ;;  %v1615_v38 = vld [vmem:[%s2317_s7 + $0x188] ss:$28 sps:$4 sm:$0xff]  }
   0xd   :  { %245 = vmatpush1.bf16.msra.mxu1 %v1557_v10  ;;  %v1611_v35 = vld [vmem:[%s2317_s7 + $0x154] ss:$28 sps:$4 sm:$0xff]   ;;  %v1617_v37 = vld [vmem:[%s2317_s7 + $0x18c] ss:$28 sps:$4 sm:$0xff]   ;;  %v1623_v39 = vld [vmem:[%s2317_s7 + $0x1c4] ss:$28 sps:$4 sm:$0xff]  }
   0xe   :  { %246 = vmatprep.subr.bf16.mxu1 %v1558_v11  ;;  %v1621_v40 = vld [vmem:[%s2317_s7 + $0x1c0] ss:$28 sps:$4 sm:$0xff]   ;;  %v1627_v42 = vld [vmem:[%s2317_s7 + $0x1f8] ss:$28 sps:$4 sm:$0xff]   ;;  %v1633_v44 = vld [vmem:[%s2317_s7 + $0x230] ss:$28 sps:$4 sm:$0xff]  }
   0xf   :  { %1065 = vmatpush1.bf16.msra.mxu0 %v1579_v26  ;;  %v1629_v41 = vld [vmem:[%s2317_s7 + $0x1fc] ss:$28 sps:$4 sm:$0xff]   ;;  %v1635_v43 = vld [vmem:[%s2317_s7 + $0x234] ss:$28 sps:$4 sm:$0xff]   ;;  %v1641_v45 = vld [vmem:[%s2317_s7 + $0x26c] ss:$28 sps:$4 sm:$0xff]  }
  0x10   :  { %1066 = vmatprep.subr.bf16.mxu0 %v1587_v27  ;;  %v1639_v46 = vld [vmem:[%s2317_s7 + $0x268] ss:$28 sps:$4 sm:$0xff]   ;;  %v1645_v48 = vld [vmem:[%s2317_s7 + $0x2a0] ss:$28 sps:$4 sm:$0xff]   ;;  %v1588_v0 = vld [vmem:[%s2317_s7 + $0x78] ss:$28 sps:$4 sm:$0xff]  }
  0x11   :  { %247 = vmatpush1.bf16.msra.mxu1 %v1560_v12  ;;  %v1647_v47 = vld [vmem:[%s2317_s7 + $0x2a4] ss:$28 sps:$4 sm:$0xff]   ;;  %v1590_v63 = vld [vmem:[%s2317_s7 + $0x7c] ss:$28 sps:$4 sm:$0xff]   ;;  %v1596_v1 = vld [vmem:[%s2317_s7 + $0xb4] ss:$28 sps:$4 sm:$0xff]  }
  0x12   :  { %248 = vmatprep.subr.bf16.mxu1 %v1561_v13  ;;  %v1362_v49 = vld [vmem:[%s2318_s2] ss:$0 sm:$0xff]  ;;  %v1576_v59 = vld [vmem:[%s2317_s7 + $0x8] ss:$28 sps:$4 sm:$0xff]   ;;  %v1594_v2 = vld [vmem:[%s2317_s7 + $0xb0] ss:$28 sps:$4 sm:$0xff]  }
  0x13   :  { %1067 = vmatpush1.bf16.msra.mxu0 %v1585_v28  ;;  %v1363_v51 = vld [vmem:[%s2319_s3] ss:$0 sm:$0xff]  ;;  %v1602_v3 = vld [vmem:[%s2317_s7 + $0xec] ss:$28 sps:$4 sm:$0xff]   ;;  %v1614_v7 = vld [vmem:[%s2317_s7 + $0x15c] ss:$28 sps:$4 sm:$0xff]  }
  0x14   :  { %1068 = vmatprep.subr.bf16.mxu0 %v1593_v29  ;;  %v1584_v61 = vld [vmem:[%s2317_s7 + $0x44] ss:$28 sps:$4 sm:$0xff]   ;;  %v1612_v8 = vld [vmem:[%s2317_s7 + $0x158] ss:$28 sps:$4 sm:$0xff]   ;;  %v1618_v10 = vld [vmem:[%s2317_s7 + $0x190] ss:$28 sps:$4 sm:$0xff]  }
  0x15   :  { %249 = vmatpush1.bf16.msra.mxu1 %v1563_v14  ;;  %v1582_v62 = vld [vmem:[%s2317_s7 + $0x40] ss:$28 sps:$4 sm:$0xff]   ;;  %v1600_v4 = vld [vmem:[%s2317_s7 + $0xe8] ss:$28 sps:$4 sm:$0xff]   ;;  %v1620_v9 = vld [vmem:[%s2317_s7 + $0x194] ss:$28 sps:$4 sm:$0xff]  }
  0x16   :  { %250 = vmatprep.subr.bf16.mxu1 %v1564_v15  ;;  %v1608_v5 = vld [vmem:[%s2317_s7 + $0x124] ss:$28 sps:$4 sm:$0xff]   ;;  %v1626_v11 = vld [vmem:[%s2317_s7 + $0x1cc] ss:$28 sps:$4 sm:$0xff]   ;;  %v1638_v15 = vld [vmem:[%s2317_s7 + $0x23c] ss:$28 sps:$4 sm:$0xff]  }
  0x17   :  { %1069 = vmatpush1.bf16.msra.mxu0 %v1591_v30  ;;  %v1606_v6 = vld [vmem:[%s2317_s7 + $0x120] ss:$28 sps:$4 sm:$0xff]   ;;  %v1624_v12 = vld [vmem:[%s2317_s7 + $0x1c8] ss:$28 sps:$4 sm:$0xff]   ;;  %v1651_v23 = vld [vmem:[%s2317_s7 + $0x2d8] ss:$28 sps:$4 sm:$0xff]  }
  0x18   :  { %1070 = vmatprep.subr.bf16.mxu0 %v1599_v31  ;;  %v1632_v13 = vld [vmem:[%s2317_s7 + $0x204] ss:$28 sps:$4 sm:$0xff]   ;;  %v1653_v21 = vld [vmem:[%s2317_s7 + $0x2dc] ss:$28 sps:$4 sm:$0xff]   ;;  %v1659_v25 = vld [vmem:[%s2317_s7 + $0x314] ss:$28 sps:$4 sm:$0xff]  }
  0x19   :  { %251 = vmatpush1.bf16.msra.mxu1 %v1566_v16  ;;  %v1630_v14 = vld [vmem:[%s2317_s7 + $0x200] ss:$28 sps:$4 sm:$0xff]   ;;  %v1636_v16 = vld [vmem:[%s2317_s7 + $0x238] ss:$28 sps:$4 sm:$0xff]   ;;  %v1657_v27 = vld [vmem:[%s2317_s7 + $0x310] ss:$28 sps:$4 sm:$0xff]  }
  0x1a   :  { %252 = vmatprep.subr.bf16.mxu1 %v1567_v17  ;;  %v1644_v17 = vld [vmem:[%s2317_s7 + $0x274] ss:$28 sps:$4 sm:$0xff]   ;;  %v1656_v22 = vld [vmem:[%s2317_s7 + $0x2e4] ss:$28 sps:$4 sm:$0xff]   ;;  %v1662_v26 = vld [vmem:[%s2317_s7 + $0x31c] ss:$28 sps:$4 sm:$0xff]  }
  0x1b   :  { %1071 = vmatpush1.bf16.msra.mxu0 %v1597_v32  ;;  %v1660_v28 = vld [vmem:[%s2317_s7 + $0x318] ss:$28 sps:$4 sm:$0xff]   ;;  %v1665_v29 = vld [vmem:[%s2317_s7 + $0x34c] ss:$28 sps:$4 sm:$0xff]  }
  0x1c   :  { %1072 = vmatprep.subr.bf16.mxu0 %v1605_v33  ;;  %v1668_v30 = vld [vmem:[%s2317_s7 + $0x354] ss:$28 sps:$4 sm:$0xff]   ;;  %v1663_v31 = vld [vmem:[%s2317_s7 + $0x348] ss:$28 sps:$4 sm:$0xff]  }
  0x1d   :  { %253 = vmatpush1.bf16.msra.mxu1 %v1569_v18  ;;  %v1642_v18 = vld [vmem:[%s2317_s7 + $0x270] ss:$28 sps:$4 sm:$0xff]  }
  0x1e   :  { %254 = vmatprep.subr.bf16.mxu1 %v1570_v19  ;;  %v1650_v19 = vld [vmem:[%s2317_s7 + $0x2ac] ss:$28 sps:$4 sm:$0xff]   ;;  %v1671_v33 = vld [vmem:[%s2317_s7 + $0x14] ss:$28 sps:$4 sm:$0xff]  }
  0x1f   :  { %1073 = vmatpush1.bf16.msra.mxu0 %v1603_v34  ;;  %v1666_v32 = vld [vmem:[%s2317_s7 + $0x350] ss:$28 sps:$4 sm:$0xff]   ;;  %v1672_v34 = vld [vmem:[%s2317_s7 + $0x1d8] ss:$28 sps:$4 sm:$0xff]  }
  0x20   :  { %1074 = vmatprep.subr.bf16.mxu0 %v1611_v35  ;;  %v285_v35 = vlaneseq }
  0x21   :  { %255 = vmatpush1.bf16.msra.mxu1 %v1572_v20  ;;  %v1648_v20 = vld [vmem:[%s2317_s7 + $0x2a8] ss:$28 sps:$4 sm:$0xff]  }
  0x22   :  { %1105 = vmatprep.subr.bf16.mxu1 %v1578_v24  ;;  %v1654_v24 = vld [vmem:[%s2317_s7 + $0x2e0] ss:$28 sps:$4 sm:$0xff]  }
  0x23   :  { %1075 = vmatpush1.bf16.msra.mxu0 %v1609_v36  ;;  %v2107_v36 = vshrl.u32 %v285_v35, 7  ;;  %v1720_v35 = vld [vmem:[%s2317_s7 + $0x27c] ss:$28 sps:$4 sm:$0xff]  }
  0x24   :  { %1076 = vmatprep.subr.bf16.mxu0 %v1617_v37 }
  0x25   :  { %v2110_v37 = vsub.s32 0, %v2107_v36 }
  0x27   :  { %1077 = vmatpush1.bf16.msra.mxu0 %v1615_v38  ;;  %v283_v38 = vld [vmem:[%s2320_s5] sm:$0x3] }
  0x28   :  { %1078 = vmatprep.subr.bf16.mxu0 %v1623_v39  ;;  %v2116_v39 = vsub.s32 1, %v2107_v36 }
  0x2b   :  { %1079 = vmatpush1.bf16.msra.mxu0 %v1621_v40  ;;  %v299_v40 = vld [vmem:[%s2321_s6] sm:$0x3] }
  0x2c   :  { %1080 = vmatprep.subr.bf16.mxu0 %v1629_v41  ;;  %v288_v41 = vrot.slane %v283_v38, %v2110_v37 }
  0x2f   :  { %1081 = vmatpush1.bf16.msra.mxu0 %v1627_v42  ;;  %v292_v42 = vrot.slane %v283_v38, %v2116_v39  ;;  %v1718_v38 = vld [vmem:[%s2317_s7 + $0x278] ss:$28 sps:$4 sm:$0xff]  }
  0x30   :  { %1082 = vmatprep.subr.bf16.mxu0 %v1635_v43  ;;  %v304_v43 = vrot.slane %v299_v40, %v2110_v37 }
  0x33   :  { %1083 = vmatpush1.bf16.msra.mxu0 %v1633_v44 }
  0x34   :  { %1084 = vmatprep.subr.bf16.mxu0 %v1641_v45  ;;  %v308_v45 = vrot.slane %v299_v40, %v2116_v39  ;;  %v1723_v40 = vld [vmem:[%s2317_s7 + $0x2b4] ss:$28 sps:$4 sm:$0xff]  }
  0x37   :  { %1085 = vmatpush1.bf16.msra.mxu0 %v1639_v46 }
  0x38   :  { %1086 = vmatprep.subr.bf16.mxu0 %v1647_v47 }
  0x3b   :  { %1087 = vmatpush1.bf16.msra.mxu0 %v1645_v48 }
  0x3c   :  { %1088 = vmatprep.subr.bf16.mxu0 %v1653_v21  ;;  %v1701_v21 = vld [vmem:[%s2317_s7 + $0x164] ss:$28 sps:$4 sm:$0xff]  }
  0x3f   :  { %1089 = vmatpush1.bf16.msra.mxu0 %v1651_v23  ;;  %v1699_v23 = vld [vmem:[%s2317_s7 + $0x160] ss:$28 sps:$4 sm:$0xff]  }
  0x40   :  { %1090 = vmatprep.subr.bf16.mxu0 %v1659_v25  ;;  %v1706_v25 = vld [vmem:[%s2317_s7 + $0x19c] ss:$28 sps:$4 sm:$0xff]  }
  0x43   :  { %1091 = vmatpush1.bf16.msra.mxu0 %v1657_v27  ;;  %v1704_v27 = vld [vmem:[%s2317_s7 + $0x198] ss:$28 sps:$4 sm:$0xff]  }
  0x44   :  { %1092 = vmatprep.subr.bf16.mxu0 %v1665_v29  ;;  %v1711_v29 = vld [vmem:[%s2317_s7 + $0x1d4] ss:$28 sps:$4 sm:$0xff]  }
  0x47   :  { %1093 = vmatpush1.bf16.msra.mxu0 %v1663_v31  ;;  %v1714_v31 = vld [vmem:[%s2317_s7 + $0x20c] ss:$28 sps:$4 sm:$0xff]  }
  0x48   :  { %1148 = vmatprep.subr.bf16.mxu0 %v1671_v33  ;;  %v1717_v33 = vld [vmem:[%s2317_s7 + $0x244] ss:$28 sps:$4 sm:$0xff]  }
  0xdb   :  { %v1540_v50 = vpop.f32.mrb[0].mxu0 }
  0xdc   :  { %v131_v52 = vmul.f32 %v1540_v50, %v1362_v49  ;;  %v114_v53 = vpop.f32.mrb[1].mxu0 }
  0xdd   :  { %v130_v54 = vmul.f32 %v1362_v49, %v114_v53 }
  0xde   :  { %v140_v55 = vadd.f32 %v1363_v51, %v131_v52 }
  0xdf   :  { %v139_v56 = vadd.f32 %v1363_v51, %v130_v54 }
  0xe0   :  { %v142_v57 = vmax.f32 %v140_v55, 0.0 }
  0xe1   :  { %v141_v58 = vmax.f32 %v139_v56, 0.0 }
  0xe3   :  { %v143_v60 = vpack.c.bf16 %v142_v57, %v141_v58 }
  0xe5   :  { %273 = vmatmul.mubr.bf16.vlgmr.msra.gmra.mrb[0].mxu1 %v143_v60 }
  0xe6   :  { %1106 = vmatpush1.bf16.msra.mxu1 %v1576_v59 }
  0xe7   :  { %1107 = vmatprep.subr.bf16.mxu1 %v1584_v61 }
  0xea   :  { %1108 = vmatpush1.bf16.msra.mxu1 %v1582_v62 }
  0xeb   :  { %1109 = vmatprep.subr.bf16.mxu1 %v1590_v63  ;;  %v1669_v63 = vld [vmem:[%s2317_s7 + $0x10] ss:$28 sps:$4 sm:$0xff]  }
  0xee   :  { %1110 = vmatpush1.bf16.msra.mxu1 %v1588_v0  ;;  %v1673_v0 = vld [vmem:[%s2317_s7 + $0x18] ss:$28 sps:$4 sm:$0xff]  }
  0xef   :  { %1111 = vmatprep.subr.bf16.mxu1 %v1596_v1  ;;  %v1676_v1 = vld [vmem:[%s2317_s7 + $0x4c] ss:$28 sps:$4 sm:$0xff]  }
  0xf2   :  { %1112 = vmatpush1.bf16.msra.mxu1 %v1594_v2  ;;  %v1677_v2 = vld [vmem:[%s2317_s7 + $0x210] ss:$28 sps:$4 sm:$0xff]  }
  0xf3   :  { %1113 = vmatprep.subr.bf16.mxu1 %v1602_v3  ;;  %v1674_v3 = vld [vmem:[%s2317_s7 + $0x48] ss:$28 sps:$4 sm:$0xff]  }
  0xf6   :  { %1114 = vmatpush1.bf16.msra.mxu1 %v1600_v4  ;;  %v1678_v4 = vld [vmem:[%s2317_s7 + $0x50] ss:$28 sps:$4 sm:$0xff]  }
  0xf7   :  { %1115 = vmatprep.subr.bf16.mxu1 %v1608_v5  ;;  %v1681_v5 = vld [vmem:[%s2317_s7 + $0x84] ss:$28 sps:$4 sm:$0xff]  }
  0xfa   :  { %1116 = vmatpush1.bf16.msra.mxu1 %v1606_v6  ;;  %v1682_v6 = vld [vmem:[%s2317_s7 + $0x248] ss:$28 sps:$4 sm:$0xff]  }
  0xfb   :  { %1117 = vmatprep.subr.bf16.mxu1 %v1614_v7  ;;  %v1679_v7 = vld [vmem:[%s2317_s7 + $0x80] ss:$28 sps:$4 sm:$0xff]  }
  0xfe   :  { %1118 = vmatpush1.bf16.msra.mxu1 %v1612_v8  ;;  %v1683_v8 = vld [vmem:[%s2317_s7 + $0x88] ss:$28 sps:$4 sm:$0xff]  }
  0xff   :  { %1119 = vmatprep.subr.bf16.mxu1 %v1620_v9  ;;  %v1686_v9 = vld [vmem:[%s2317_s7 + $0xbc] ss:$28 sps:$4 sm:$0xff]  }
 0x102   :  { %1120 = vmatpush1.bf16.msra.mxu1 %v1618_v10  ;;  %v1687_v10 = vld [vmem:[%s2317_s7 + $0x280] ss:$28 sps:$4 sm:$0xff]  }
 0x103   :  { %1121 = vmatprep.subr.bf16.mxu1 %v1626_v11  ;;  %v1684_v11 = vld [vmem:[%s2317_s7 + $0xb8] ss:$28 sps:$4 sm:$0xff]  }
 0x106   :  { %1122 = vmatpush1.bf16.msra.mxu1 %v1624_v12  ;;  %v1688_v12 = vld [vmem:[%s2317_s7 + $0xc0] ss:$28 sps:$4 sm:$0xff]  }
 0x107   :  { %1123 = vmatprep.subr.bf16.mxu1 %v1632_v13  ;;  %v1691_v13 = vld [vmem:[%s2317_s7 + $0xf4] ss:$28 sps:$4 sm:$0xff]  }
 0x10a   :  { %1124 = vmatpush1.bf16.msra.mxu1 %v1630_v14  ;;  %v1692_v14 = vld [vmem:[%s2317_s7 + $0x2b8] ss:$28 sps:$4 sm:$0xff]  }
 0x10b   :  { %1125 = vmatprep.subr.bf16.mxu1 %v1638_v15  ;;  %v1689_v15 = vld [vmem:[%s2317_s7 + $0xf0] ss:$28 sps:$4 sm:$0xff]  }
 0x10e   :  { %1126 = vmatpush1.bf16.msra.mxu1 %v1636_v16  ;;  %v1693_v16 = vld [vmem:[%s2317_s7 + $0xf8] ss:$28 sps:$4 sm:$0xff]  }
 0x10f   :  { %1127 = vmatprep.subr.bf16.mxu1 %v1644_v17  ;;  %v1696_v17 = vld [vmem:[%s2317_s7 + $0x12c] ss:$28 sps:$4 sm:$0xff]  }
 0x112   :  { %1128 = vmatpush1.bf16.msra.mxu1 %v1642_v18  ;;  %v1697_v18 = vld [vmem:[%s2317_s7 + $0x2f0] ss:$28 sps:$4 sm:$0xff]  }
 0x113   :  { %1129 = vmatprep.subr.bf16.mxu1 %v1650_v19  ;;  %v1694_v19 = vld [vmem:[%s2317_s7 + $0x128] ss:$28 sps:$4 sm:$0xff]  }
 0x116   :  { %1130 = vmatpush1.bf16.msra.mxu1 %v1648_v20  ;;  %v1698_v20 = vld [vmem:[%s2317_s7 + $0x130] ss:$28 sps:$4 sm:$0xff]  }
 0x117   :  { %1131 = vmatprep.subr.bf16.mxu1 %v1656_v22  ;;  %v1702_v22 = vld [vmem:[%s2317_s7 + $0x328] ss:$28 sps:$4 sm:$0xff]  }
 0x11a   :  { %1132 = vmatpush1.bf16.msra.mxu1 %v1654_v24  ;;  %v1703_v24 = vld [vmem:[%s2317_s7 + $0x168] ss:$28 sps:$4 sm:$0xff]  }
 0x11b   :  { %1133 = vmatprep.subr.bf16.mxu1 %v1662_v26  ;;  %v1707_v26 = vld [vmem:[%s2317_s7 + $0x360] ss:$28 sps:$4 sm:$0xff]  }
 0x11e   :  { %1134 = vmatpush1.bf16.msra.mxu1 %v1660_v28  ;;  %v1708_v28 = vld [vmem:[%s2317_s7 + $0x1a0] ss:$28 sps:$4 sm:$0xff]  }
 0x11f   :  { %1135 = vmatprep.subr.bf16.mxu1 %v1668_v30  ;;  %v1709_v30 = vld [vmem:[%s2317_s7 + $0x1d0] ss:$28 sps:$4 sm:$0xff]  }
 0x122   :  { %1136 = vmatpush1.bf16.msra.mxu1 %v1666_v32  ;;  %v1712_v32 = vld [vmem:[%s2317_s7 + $0x208] ss:$28 sps:$4 sm:$0xff]  }
 0x123   :  { %1512 = vmatprep.subr.bf16.mxu1 %v1672_v34  ;;  %v1715_v34 = vld [vmem:[%s2317_s7 + $0x240] ss:$28 sps:$4 sm:$0xff]  }
 0x1b8   :  { %v274_v44 = vpop.f32.mrb[0].mxu1 }
 0x1b9   :  { %v295_v46 = vmul.f32 %v288_v41, %v274_v44  ;;  %v276_v47 = vpop.f32.mrb[1].mxu1  ;;  %v1729_v44 = vld [vmem:[%s2317_s7 + $0x324] ss:$28 sps:$4 sm:$0xff]  }
 0x1ba   :  { %v296_v48 = vmul.f32 %v292_v42, %v276_v47  ;;  %v278_v49 = vpop.f32.mrb[2].mxu1  ;;  %v1730_v47 = vld [vmem:[%s2317_s7 + $0x358] ss:$28 sps:$4 sm:$0xff]  }
 0x1bb   :  { %v311_v50 = vadd.f32 %v304_v43, %v295_v46  ;;  %v297_v51 = vmul.f32 %v288_v41, %v278_v49  ;;  %v280_v52 = vpop.f32.mrb[3].mxu1  ;;  %v1721_v41 = vld [vmem:[%s2317_s7 + $0x2b0] ss:$28 sps:$4 sm:$0xff]   ;;  %v1732_v46 = vld [vmem:[%s2317_s7 + $0x35c] ss:$28 sps:$4 sm:$0xff]  }
 0x1bc   :  { %v312_v53 = vadd.f32 %v308_v45, %v296_v48  ;;  %v298_v54 = vmul.f32 %v292_v42, %v280_v52  ;;  %v1726_v42 = vld [vmem:[%s2317_s7 + $0x2ec] ss:$28 sps:$4 sm:$0xff]   ;;  %v461_v48 = vsub.s32 2, %v2107_v36  ;;  %v2273_v49 = vld [vmem:[%s2322_s8] sm:$0x7f] }
 0x1bd   :  { %v313_v55 = vadd.f32 %v304_v43, %v297_v51  ;;  %v315_v57 = vmax.f32 %v311_v50, 0.0  ;;  %v1724_v43 = vld [vmem:[%s2317_s7 + $0x2e8] ss:$28 sps:$4 sm:$0xff]   ;;  %v465_v50 = vsub.s32 3, %v2107_v36  ;;  %v454_v51 = vrot.slane %v2273_v49, %v2110_v37 }
 0x1be   :  { %v314_v56 = vadd.f32 %v308_v45, %v298_v54  ;;  %v316_v59 = vmax.f32 %v312_v53, 0.0  ;;  %v1727_v45 = vld [vmem:[%s2317_s7 + $0x320] ss:$28 sps:$4 sm:$0xff]   ;;  %v462_v52 = vrot.slane %v2273_v49, %v461_v48  ;;  %v458_v53 = vrot.slane %v2273_v49, %v2116_v39 }
 0x1bf   :  { %v317_v58 = vmax.f32 %v313_v55, 0.0  ;;  %v466_v54 = vrot.slane %v2273_v49, %v465_v50 }
 0x1c0   :  { %v318_v60 = vmax.f32 %v314_v56, 0.0 }
 0x1c1   :  { %v2125_v61 = vpack.c.bf16 %v317_v58, %v315_v57 }
 0x1c2   :  { %v320_v62 = vpack.c.bf16 %v318_v60, %v316_v59 }
 0x1c4   :  { %1094 = vmatprep.mubr.bf16.mxu0 %v320_v62  ;;  %1137 = vmatprep.mubr.bf16.mxu1 %v320_v62 }
 0x1c5   :  { %1095 = vmatmul.mubr.bf16.vlgmr.msra.gmra.mrb[4].mxu0 %v2125_v61  ;;  %1138 = vmatmul.mubr.bf16.vlgmr.msra.gmra.mrb[4].mxu1 %v2125_v61 }
 0x1c6   :  { %1149 = vmatpush1.bf16.msra.mxu0 %v1669_v63  ;;  %1513 = vmatpush3.bf16.msra.mxu1 %v1673_v0 }
 0x1c7   :  { %1180 = vmatprep.mubr.bf16.mxu0 %v320_v62  ;;  %1223 = vmatprep.mubr.bf16.mxu1 %v320_v62 }
 0x1c8   :  { %1150 = vmatprep.subr.bf16.mxu0 %v1676_v1  ;;  %1514 = vmatprep.subr.bf16.mxu1 %v1677_v2 }
 0x1ca   :  { %1151 = vmatpush1.bf16.msra.mxu0 %v1674_v3  ;;  %1515 = vmatpush3.bf16.msra.mxu1 %v1678_v4 }
 0x1cb   :  { %1152 = vmatprep.subr.bf16.mxu0 %v1681_v5  ;;  %1516 = vmatprep.subr.bf16.mxu1 %v1682_v6 }
 0x1ce   :  { %1153 = vmatpush1.bf16.msra.mxu0 %v1679_v7  ;;  %1517 = vmatpush3.bf16.msra.mxu1 %v1683_v8 }
 0x1cf   :  { %1154 = vmatprep.subr.bf16.mxu0 %v1686_v9  ;;  %1518 = vmatprep.subr.bf16.mxu1 %v1687_v10 }
 0x1d2   :  { %1155 = vmatpush1.bf16.msra.mxu0 %v1684_v11  ;;  %1519 = vmatpush3.bf16.msra.mxu1 %v1688_v12 }
 0x1d3   :  { %1156 = vmatprep.subr.bf16.mxu0 %v1691_v13  ;;  %1520 = vmatprep.subr.bf16.mxu1 %v1692_v14 }
 0x1d6   :  { %1157 = vmatpush1.bf16.msra.mxu0 %v1689_v15  ;;  %1521 = vmatpush3.bf16.msra.mxu1 %v1693_v16 }
 0x1d7   :  { %1158 = vmatprep.subr.bf16.mxu0 %v1696_v17  ;;  %1522 = vmatprep.subr.bf16.mxu1 %v1697_v18 }
 0x1da   :  { %1159 = vmatpush1.bf16.msra.mxu0 %v1694_v19  ;;  %1523 = vmatpush3.bf16.msra.mxu1 %v1698_v20 }
 0x1db   :  { %1160 = vmatprep.subr.bf16.mxu0 %v1701_v21  ;;  %1524 = vmatprep.subr.bf16.mxu1 %v1702_v22 }
 0x1de   :  { %1161 = vmatpush1.bf16.msra.mxu0 %v1699_v23  ;;  %1525 = vmatpush3.bf16.msra.mxu1 %v1703_v24 }
 0x1df   :  { %1162 = vmatprep.subr.bf16.mxu0 %v1706_v25  ;;  %1526 = vmatprep.subr.bf16.mxu1 %v1707_v26 }
 0x1e2   :  { %1163 = vmatpush1.bf16.msra.mxu0 %v1704_v27  ;;  %1527 = vmatpush3.bf16.msra.mxu1 %v1708_v28 }
 0x1e3   :  { %1164 = vmatprep.subr.bf16.mxu0 %v1711_v29 }
 0x1e5   :  { %1224 = vmatmul.mubr.bf16.vlgmr.msra.gmra.mrb[8].mxu1 %v2125_v61 }
 0x1e6   :  { %1165 = vmatpush1.bf16.msra.mxu0 %v1709_v30 }
 0x1e7   :  { %1166 = vmatprep.subr.bf16.mxu0 %v1714_v31 }
 0x1ea   :  { %1167 = vmatpush1.bf16.msra.mxu0 %v1712_v32 }
 0x1eb   :  { %1168 = vmatprep.subr.bf16.mxu0 %v1717_v33 }
 0x1ee   :  { %1169 = vmatpush1.bf16.msra.mxu0 %v1715_v34 }
 0x1ef   :  { %1170 = vmatprep.subr.bf16.mxu0 %v1720_v35 }
 0x1f2   :  { %1171 = vmatpush1.bf16.msra.mxu0 %v1718_v38 }
 0x1f3   :  { %1172 = vmatprep.subr.bf16.mxu0 %v1723_v40  ;;  %v477_v40 = vsub.s32 6, %v2107_v36 }
 0x1f6   :  { %1173 = vmatpush1.bf16.msra.mxu0 %v1721_v41 }
 0x1f7   :  { %1174 = vmatprep.subr.bf16.mxu0 %v1726_v42 }
 0x1fa   :  { %1175 = vmatpush1.bf16.msra.mxu0 %v1724_v43 }
 0x1fb   :  { %1176 = vmatprep.subr.bf16.mxu0 %v1729_v44 }
 0x1fe   :  { %1177 = vmatpush1.bf16.msra.mxu0 %v1727_v45  ;;  %v478_v45 = vrot.slane %v2273_v49, %v477_v40 }
 0x1ff   :  { %1178 = vmatprep.subr.bf16.mxu0 %v1732_v46 }
 0x202   :  { %1179 = vmatpush1.bf16.msra.mxu0 %v1730_v47 }
 0x205   :  { %1181 = vmatmul.mubr.bf16.vlgmr.msra.gmra.mrb[8].mxu0 %v2125_v61 }
 0x298   :  { %v1096_v55 = vpop.f32.mrb[4].mxu0  ;;  %v1139_v56 = vpop.f32.mrb[4].mxu1 }
 0x299   :  { %v1097_v57 = vadd.f32 %v1096_v55, %v454_v51  ;;  %v1140_v58 = vadd.f32 %v1139_v56, %v462_v52  ;;  %v1098_v59 = vpop.f32.mrb[5].mxu0  ;;  %v1141_v60 = vpop.f32.mrb[5].mxu1 }
 0x29a   :  { %v1099_v61 = vadd.f32 %v1098_v59, %v458_v53  ;;  %v1142_v62 = vadd.f32 %v1141_v60, %v466_v54  ;;  %v1100_v63 = vpop.f32.mrb[6].mxu0  ;;  %v1143_v0 = vpop.f32.mrb[6].mxu1 }
 0x29b   :  { %v1232_v1 = vsub.f32 0.0, %v1097_v57  ;;  %v1234_v2 = vsub.f32 0.0, %v1140_v58  ;;  %v1101_v37 = vadd.f32 %v1100_v63, %v454_v51  ;;  %v1144_v3 = vadd.f32 %v1143_v0, %v462_v52  ;;  %v1102_v4 = vpop.f32.mrb[7].mxu0  ;;  %v1145_v5 = vpop.f32.mrb[7].mxu1 }
 0x29c   :  { %v1233_v6 = vsub.f32 0.0, %v1099_v61  ;;  %v1235_v39 = vsub.f32 0.0, %v1142_v62  ;;  %v1103_v7 = vadd.f32 %v1102_v4, %v458_v53  ;;  %v1146_v8 = vadd.f32 %v1145_v5, %v466_v54 }
 0x29d   :  { %v1246_v9 = vmul.f32 1.442695, %v1232_v1  ;;  %v1250_v10 = vmul.f32 1.442695, %v1234_v2  ;;  %v1239_v11 = vsub.f32 0.0, %v1101_v37  ;;  %v1241_v12 = vsub.f32 0.0, %v1144_v3 }
 0x29e   :  { %v1248_v13 = vmul.f32 1.442695, %v1233_v6  ;;  %v1252_v14 = vmul.f32 1.442695, %v1235_v39  ;;  %v1240_v15 = vsub.f32 0.0, %v1103_v7  ;;  %v1242_v16 = vsub.f32 0.0, %v1146_v8 }
 0x29f   :  { %1733 = vpow2.f32 %v1246_v9  ;;  %v1260_v17 = vmul.f32 1.442695, %v1239_v11  ;;  %v1264_v18 = vmul.f32 1.442695, %v1241_v12  ;;  %v469_v6 = vsub.s32 4, %v2107_v36 }
 0x2a0   :  { %1735 = vpow2.f32 %v1250_v10  ;;  %v1262_v19 = vmul.f32 1.442695, %v1240_v15  ;;  %v1266_v20 = vmul.f32 1.442695, %v1242_v16  ;;  %v473_v39 = vsub.s32 5, %v2107_v36 }
 0x2a1   :  { %1737 = vpow2.f32 %v1248_v13  ;;  %v470_v7 = vrot.slane %v2273_v49, %v469_v6 }
 0x2a2   :  { %1739 = vpow2.f32 %v1252_v14  ;;  %v474_v8 = vrot.slane %v2273_v49, %v473_v39 }
 0x2a3   :  { %1741 = vpow2.f32 %v1260_v17 }
 0x2a4   :  { %1743 = vpow2.f32 %v1264_v18 }
 0x2a5   :  { %1745 = vpow2.f32 %v1262_v19 }
 0x2a6   :  { %1747 = vpow2.f32 %v1266_v20 }
 0x2a9   :  { %v1734_v21 = vpop.eup %1733 }
 0x2aa   :  { %v1736_v22 = vpop.eup %1735  ;;  %v1274_v23 = vadd.f32 1.0, %v1734_v21 }
 0x2ab   :  { %v1738_v24 = vpop.eup %1737  ;;  %v1276_v25 = vadd.f32 1.0, %v1736_v22 }
 0x2ac   :  { %v1740_v26 = vpop.eup %1739  ;;  %1749 = vrcp.f32 %v1274_v23  ;;  %v1275_v27 = vadd.f32 1.0, %v1738_v24 }
 0x2ad   :  { %v1742_v28 = vpop.eup %1741  ;;  %1751 = vrcp.f32 %v1276_v25  ;;  %v1277_v29 = vadd.f32 1.0, %v1740_v26 }
 0x2ae   :  { %v1744_v30 = vpop.eup %1743  ;;  %1753 = vrcp.f32 %v1275_v27  ;;  %v1281_v31 = vadd.f32 1.0, %v1742_v28 }
 0x2af   :  { %v1746_v32 = vpop.eup %1745  ;;  %1755 = vrcp.f32 %v1277_v29  ;;  %v1283_v33 = vadd.f32 1.0, %v1744_v30 }
 0x2b0   :  { %v1748_v34 = vpop.eup %1747  ;;  %1757 = vrcp.f32 %v1281_v31  ;;  %v1282_v35 = vadd.f32 1.0, %v1746_v32 }
 0x2b1   :  { %1759 = vrcp.f32 %v1283_v33  ;;  %v1284_v38 = vadd.f32 1.0, %v1748_v34 }
 0x2b2   :  { %1761 = vrcp.f32 %v1282_v35 }
 0x2b3   :  { %1763 = vrcp.f32 %v1284_v38 }
 0x2b6   :  { %v1750_v41 = vpop.eup %1749 }
 0x2b7   :  { %v1752_v42 = vpop.eup %1751 }
 0x2b8   :  { %v1754_v43 = vpop.eup %1753  ;;  %v1528_v44 = vpop.f32.mrb[8].mxu1 }
 0x2b9   :  { %v1756_v46 = vpop.eup %1755  ;;  %v1500_v47 = vpack.c.bf16 %v1754_v43, %v1750_v41  ;;  %v1529_v48 = vpop.f32.mrb[9].mxu1 }
 0x2ba   :  { %v1758_v50 = vpop.eup %1757  ;;  %v1501_v51 = vpack.c.bf16 %v1756_v46, %v1752_v42  ;;  %v1530_v52 = vadd.f32 %v1529_v48, %v1528_v44  ;;  %v1531_v53 = vpop.f32.mrb[10].mxu1 }
 0x2bb   :  { %v1760_v54 = vpop.eup %1759  ;;  %1346 = vst [vmem:[%s2323_s9] sm:$0xff] %v1500_v47  ;;  %v1532_v55 = vpop.f32.mrb[11].mxu1 }
 0x2bc   :  { %v1762_v56 = vpop.eup %1761  ;;  %1347 = vst [vmem:[%s2323_s9 + $0x8] sm:$0xff] %v1501_v51  ;;  %v1226_v57 = vadd.f32 %v1530_v52, %v478_v45  ;;  %v1533_v58 = vadd.f32 %v1532_v55, %v1531_v53 }
 0x2bd   :  { %v1764_v59 = vpop.eup %1763  ;;  %v1504_v60 = vpack.c.bf16 %v1762_v56, %v1758_v50 }
 0x2be   :  { %v1505_v61 = vpack.c.bf16 %v1764_v59, %v1760_v54  ;;  %v1238_v62 = vsub.f32 0.0, %v1226_v57  ;;  %v1229_v63 = vadd.f32 %v1533_v58, %v478_v45 }
 0x2bf   :  { %1351 = vst [vmem:[%s2323_s9 + $0x1c] sm:$0xff] %v1504_v60 }
 0x2c0   :  { %1352 = vst [vmem:[%s2323_s9 + $0x24] sm:$0xff] %v1505_v61  ;;  %v1258_v0 = vmul.f32 1.442695, %v1238_v62  ;;  %v1245_v1 = vsub.f32 0.0, %v1229_v63 }
 0x2c2   :  { %1765 = vpow2.f32 %v1258_v0  ;;  %v1272_v2 = vmul.f32 1.442695, %v1245_v1 }
 0x2c4   :  { %1767 = vpow2.f32 %v1272_v2 }
 0x2cc   :  { %v1766_v37 = vpop.eup %1765 }
 0x2cd   :  { %v1280_v3 = vadd.f32 1.0, %v1766_v37 }
 0x2ce   :  { %v1768_v4 = vpop.eup %1767 }
 0x2cf   :  { %1769 = vrcp.f32 %v1280_v3  ;;  %v1287_v5 = vadd.f32 1.0, %v1768_v4 }
 0x2d1   :  { %1771 = vrcp.f32 %v1287_v5 }
 0x2d8   :  { %v1182_v9 = vpop.f32.mrb[8].mxu0 }
 0x2d9   :  { %v1770_v10 = vpop.eup %1769  ;;  %v1183_v11 = vadd.f32 %v1182_v9, %v470_v7  ;;  %v1184_v12 = vpop.f32.mrb[9].mxu0 }
 0x2da   :  { %v1503_v13 = vpack.c.bf16 %v1770_v10, %v1770_v10  ;;  %v1185_v14 = vadd.f32 %v1184_v12, %v474_v8  ;;  %v1186_v15 = vpop.f32.mrb[10].mxu0 }
 0x2db   :  { %v1772_v16 = vpop.eup %1771  ;;  %v1236_v17 = vsub.f32 0.0, %v1183_v11  ;;  %v1187_v18 = vadd.f32 %v1186_v15, %v470_v7  ;;  %v1188_v19 = vpop.f32.mrb[11].mxu0 }
 0x2dc   :  { %1350 = vst.msk [vmem:[%s2323_s9 + $0x18] sm:$0xf] %vm1349_vm4, %v1503_v13  ;;  %v1507_v36 = vpack.c.bf16 %v1772_v16, %v1772_v16  ;;  %v1237_v20 = vsub.f32 0.0, %v1185_v14  ;;  %v1189_v49 = vadd.f32 %v1188_v19, %v474_v8 }
 0x2dd   :  { %v1254_v21 = vmul.f32 1.442695, %v1236_v17  ;;  %v1243_v22 = vsub.f32 0.0, %v1187_v18 }
 0x2de   :  { %1354 = vst.msk [vmem:[%s2323_s9 + $0x34] sm:$0xf] %vm1349_vm4, %v1507_v36  ;;  %v1256_v23 = vmul.f32 1.442695, %v1237_v20  ;;  %v1244_v24 = vsub.f32 0.0, %v1189_v49 }
 0x2df   :  { %1773 = vpow2.f32 %v1254_v21  ;;  %v1268_v25 = vmul.f32 1.442695, %v1243_v22 }
 0x2e0   :  { %1775 = vpow2.f32 %v1256_v23  ;;  %v1270_v26 = vmul.f32 1.442695, %v1244_v24 }
 0x2e1   :  { %1777 = vpow2.f32 %v1268_v25 }
 0x2e2   :  { %1779 = vpow2.f32 %v1270_v26 }
 0x2e9   :  { %v1774_v27 = vpop.eup %1773 }
 0x2ea   :  { %v1776_v28 = vpop.eup %1775  ;;  %v1278_v29 = vadd.f32 1.0, %v1774_v27 }
 0x2eb   :  { %v1778_v30 = vpop.eup %1777  ;;  %v1279_v31 = vadd.f32 1.0, %v1776_v28 }
 0x2ec   :  { %v1780_v32 = vpop.eup %1779  ;;  %1781 = vrcp.f32 %v1278_v29  ;;  %v1285_v33 = vadd.f32 1.0, %v1778_v30 }
 0x2ed   :  { %1783 = vrcp.f32 %v1279_v31  ;;  %v1286_v34 = vadd.f32 1.0, %v1780_v32 }
 0x2ee   :  { %1785 = vrcp.f32 %v1285_v33 }
 0x2ef   :  { %1787 = vrcp.f32 %v1286_v34 }
 0x2f6   :  { %v1782_v35 = vpop.eup %1781 }
 0x2f7   :  { %v1784_v38 = vpop.eup %1783 }
 0x2f8   :  { %v1786_v40 = vpop.eup %1785  ;;  %v1502_v41 = vpack.c.bf16 %v1784_v38, %v1782_v35 }
 0x2f9   :  { %v1788_v42 = vpop.eup %1787 }
 0x2fa   :  { %1348 = vst [vmem:[%s2323_s9 + $0x10] sm:$0xff] %v1502_v41  ;;  %v1506_v43 = vpack.c.bf16 %v1788_v42, %v1786_v40 }
 0x2fc   :  { %1353 = vst [vmem:[%s2323_s9 + $0x2c] sm:$0xff] %v1506_v43 }

</bundles_post_ra>
